<compile_context>
chip_gen: v7x
topology: tpu7x:2x2x1
jax: 0.10.0
libtpu: 0.0.40
codegen_flags: <defaults>
</compile_context>

<pallas_src>
import math
import warnings
from functools import partial

import jax
import jax.numpy as jnp
from jax.experimental import pallas as pl
from jax.experimental.pallas import tpu as pltpu


def _round_up(a, b):
    return (a + b - 1) // b * b


def _cdiv(a, b):
    return (a + b - 1) // b


# ---------------- Pallas kernel: packed matmul (+bias) + LayerNorm -----------
def _patch_embed_ln_kernel(p_ref, w_ref, a_ref, g_ref, be_ref, o_ref):
    # p_ref : (TG, P*Kp)   packed patch rows (P logical rows per packed row);
    #                      lane K of every logical-row block is a constant 1.0
    #                      so the conv bias rides inside the matmul.
    # w_ref : (P*Kp, P*E)  block-diagonal flattened conv weight (+ bias row K).
    # a_ref : (P*E, P*E)   block-averaging matrix (per-logical-row mean on MXU,
    #                      avoids cross-lane XLU reductions / in-kernel reshapes).
    # g_ref / be_ref : (1, P*E)  LN gamma / beta, lane-tiled P times.
    # o_ref : (TG, P*E)    bf16 (or f32) output.
    y = jnp.dot(p_ref[...], w_ref[...], preferred_element_type=jnp.float32)
    a = a_ref[...]
    # Two-pass LN statistics: mean, then centered second moment (biased, +eps
    # inside sqrt) — numerically robust and matches torch.nn.LayerNorm.
    m = jnp.dot(y, a, preferred_element_type=jnp.float32)
    yc = y - m
    var = jnp.dot(yc * yc, a, preferred_element_type=jnp.float32)
    # TODO(synk): once patches are built in-kernel (HBM fix), these two f32
    # stats matmuls become first-order MXU cost — revisit (bf16 a_mat with f32
    # accumulation, or a denser main-matmul layout).
    yn = yc * jax.lax.rsqrt(var + 1e-5)
    o_ref[...] = (yn * g_ref[...] + be_ref[...]).astype(o_ref.dtype)


# ---------------- im2col glue (XLA) ------------------------------------------
def _im2col(x, kh, kw, stride, pad_h, pad_w):
    """x: (B, C, H, W) -> patches (B*Ho*Wo, C*kh*kw) in (C, kh, kw) order."""
    B, C, H, W = x.shape
    x_pad = jnp.pad(x, ((0, 0), (0, 0), (pad_h, pad_h), (pad_w, pad_w)))
    Ho = (H + 2 * pad_h - kh) // stride + 1
    Wo = (W + 2 * pad_w - kw) // stride + 1
    h_idx = jnp.arange(Ho)[:, None] * stride + jnp.arange(kh)[None, :]  # (Ho, kh)
    w_idx = jnp.arange(Wo)[:, None] * stride + jnp.arange(kw)[None, :]  # (Wo, kw)
    p = x_pad[:, :, h_idx, :]            # (B, C, Ho, kh, Wp)
    p = p[:, :, :, :, w_idx]             # (B, C, Ho, kh, Wo, kw)
    p = p.transpose(0, 2, 4, 1, 3, 5)    # (B, Ho, Wo, C, kh, kw)
    return p.reshape(B * Ho * Wo, C * kh * kw), Ho, Wo


def _pick_pack_factor(E):
    """How many logical rows to pack per stored row (EP = P*E output lanes)."""
    try:
        kind = jax.devices()[0].device_kind.lower()
    except Exception:  # pragma: no cover
        kind = ""
    # v6e / v7x MXUs are 256 wide -> EP=256 fills the array and halves stores;
    # v5e (and older) tiles are 128 wide -> EP=128 already saturates the MXU
    # and avoids doubling the block-diagonal zero work / VMEM.
    target_ep = 128 if ("v5" in kind or "v4" in kind) else 256
    for ep in (target_ep, 256, 128):
        if E <= ep and ep % E == 0:
            return ep // E
    if E % 128 != 0:
        warnings.warn(
            "overlap_patch_embed: embed_dim=%d does not divide 128/256 and is "
            "not a multiple of 128 -> falling back to the non-lane-dense path "
            "(masked stores, dense averaging matrix)." % E)
    return 1


# ---------------- fused forward (jitted so the XLA glue fuses) ----------------
@partial(jax.jit, static_argnames=("stride", "use_bf16"))
def _overlap_patch_embed_impl(x, conv_w, conv_b, ln_g, ln_b, *, stride, use_bf16):
    B, C, H, W = x.shape
    E, _, kh, kw = conv_w.shape
    mm_dtype = jnp.bfloat16 if use_bf16 else jnp.float32
    out_dtype = mm_dtype   # next encoder block consumes bf16; f32 parity path kept

    # Cast to bf16 *before* im2col: the expanded patch array is only ever
    # materialized once, already in bf16.
    patches, Ho, Wo = _im2col(x.astype(mm_dtype), kh, kw, stride, kh // 2, kw // 2)
    N, K = patches.shape                               # N = B*Ho*Wo, K = C*kh*kw

    # ---- layout parameters ---------------------------------------------------
    # +1 reserves a K lane for the folded conv bias (for this module K is never
    # a multiple of 128 in stage 1, so this is the same 196->256 pad as before).
    Kp = _round_up(K + 1, 128)
    P = _pick_pack_factor(E)
    EP = P * E

    G = _cdiv(N, P)                                    # packed-row count
    # Big tile (amortize ~0.35us/step), but keep >=2 grid steps when possible
    # (both v7x TensorCores get work); sublane-aligned to 8; 1024 cap keeps the
    # VMEM budget inside every generation's scoped limit.
    TG = min(1024, max(8, _round_up(_cdiv(G, 2), 8)))
    Gpad = _round_up(G, TG)
    Npad = Gpad * P

    # Single fused pad + bias-lane write -> one bf16 (Npad, Kp) materialization.
    patches = jnp.pad(patches, ((0, Npad - N), (0, Kp - K)))
    lane = jax.lax.broadcasted_iota(jnp.int32, (Npad, Kp), 1)
    patches = jnp.where(lane == K, jnp.asarray(1.0, dtype=mm_dtype), patches)
    p_packed = patches.reshape(Gpad, P * Kp)           # free row-major view

    # Block-diagonal conv weight with the bias folded into row K of each block.
    w_flat = conv_w.reshape(E, K).T.astype(jnp.float32)               # (K, E)
    w_ext = jnp.concatenate(
        [w_flat, conv_b.astype(jnp.float32)[None, :],
         jnp.zeros((Kp - K - 1, E), jnp.float32)], axis=0)            # (Kp, E)
    w_blk = jnp.kron(jnp.eye(P, dtype=jnp.float32), w_ext).astype(mm_dtype)

    # Block-averaging matrix: per-logical-row mean via the MXU (stays f32).
    a_mat = jnp.kron(jnp.eye(P, dtype=jnp.float32),
                     jnp.full((E, E), 1.0 / E, dtype=jnp.float32))    # (EP, EP)

    g_pk = jnp.tile(ln_g.astype(jnp.float32), P).reshape(1, EP)
    be_pk = jnp.tile(ln_b.astype(jnp.float32), P).reshape(1, EP)

    in_b = jnp.dtype(mm_dtype).itemsize
    out_b = jnp.dtype(out_dtype).itemsize

    # Explicit VMEM budget: double-buffered operands/outputs + f32 temporaries
    # (y, m, yc, yc*yc, var, epilogue) + slack for internal scratch.
    vmem_budget = (2 * (TG * P * Kp * in_b            # packed patch tile
                        + P * Kp * EP * in_b          # block-diag weight
                        + EP * EP * 4                 # averaging matrix
                        + 2 * EP * 4                  # gamma, beta
                        + TG * EP * out_b)            # output tile
                   + 6 * TG * EP * 4                  # f32 temporaries
                   + (2 << 20))
    vmem_limit = int(min(max(vmem_budget, 16 << 20), 64 << 20))

    cost = pl.CostEstimate(
        flops=2 * Gpad * (P * Kp) * EP + 4 * Gpad * EP * EP,
        transcendentals=Gpad * EP,
        bytes_accessed=(Gpad * P * Kp * in_b + Gpad * EP * out_b
                        + P * Kp * EP * in_b + EP * EP * 4),
    )

    out_packed = pl.pallas_call(
        _patch_embed_ln_kernel,
        out_shape=jax.ShapeDtypeStruct((Gpad, EP), out_dtype),
        grid_spec=pltpu.PrefetchScalarGridSpec(
            num_scalar_prefetch=0,
            grid=(Gpad // TG,),
            in_specs=[
                pl.BlockSpec((TG, P * Kp), lambda i: (i, 0)),   # packed patches
                pl.BlockSpec((P * Kp, EP), lambda i: (0, 0)),   # block-diag weight
                pl.BlockSpec((EP, EP), lambda i: (0, 0)),       # averaging matrix
                pl.BlockSpec((1, EP), lambda i: (0, 0)),        # LN gamma
                pl.BlockSpec((1, EP), lambda i: (0, 0)),        # LN beta
            ],
            out_specs=pl.BlockSpec((TG, EP), lambda i: (i, 0)),
        ),
        compiler_params=pltpu.CompilerParams(
            dimension_semantics=("parallel",),
            vmem_limit_bytes=vmem_limit),
        cost_estimate=cost,
    )(p_packed, w_blk, a_mat, g_pk, be_pk)

    # Packed (Gpad, P*E) is row-major identical to (Npad, E): free reshape.
    out = out_packed.reshape(Npad, E)[:N]
    return out.reshape(B, Ho * Wo, E)


def overlap_patch_embed(x, conv_w, conv_b, ln_g, ln_b, *, patch_size, stride,
                        use_bf16=True):
    """Forward pass of OverlapPatchEmbed.

    x: (B, C, H, W) f32 NCHW; conv_w: (E, C, kh, kw); conv_b/ln_g/ln_b: (E,).
    Returns (out, Ho, Wo) with out of shape (B, Ho*Wo, E) in bf16 (use_bf16=True)
    or f32 (use_bf16=False, parity path).
    """
    B, C, H, W = x.shape
    kh = kw = patch_size
    pad = patch_size // 2
    Ho = (H + 2 * pad - kh) // stride + 1
    Wo = (W + 2 * pad - kw) // stride + 1
    out = _overlap_patch_embed_impl(x, conv_w, conv_b, ln_g, ln_b,
                                    stride=stride, use_bf16=use_bf16)
    return out, Ho, Wo


# ---------------- pure-JAX reference (for sanity check) -----------------------
def _reference(x, conv_w, conv_b, ln_g, ln_b, *, patch_size, stride):
    pad = patch_size // 2
    y = jax.lax.conv_general_dilated(
        x, conv_w, window_strides=(stride, stride),
        padding=((pad, pad), (pad, pad)),
        dimension_numbers=("NCHW", "OIHW", "NCHW"))
    y = y + conv_b[None, :, None, None]
    B, E, Ho, Wo = y.shape
    y = y.reshape(B, E, Ho * Wo).transpose(0, 2, 1)          # (B, N, E)
    mean = jnp.mean(y, axis=-1, keepdims=True)
    var = jnp.mean((y - mean) ** 2, axis=-1, keepdims=True)
    yn = (y - mean) * jax.lax.rsqrt(var + 1e-5)
    return yn * ln_g + ln_b, Ho, Wo


if __name__ == "__main__":
    # Small shapes consistent with the module (stage-1 patch embed):
    #   patch_size=7, stride=4, in_chans=4, embed_dim=32
    B, C, H, W = 2, 4, 16, 16
    patch_size, stride, embed_dim = 7, 4, 32

    key = jax.random.PRNGKey(0)
    k_x, k_w = jax.random.split(key)

    x = jax.random.normal(k_x, (B, C, H, W), dtype=jnp.float32)

    # Deterministic parameter init matching _init_weights:
    #   Conv2d: weight ~ N(0, sqrt(2 / (kh*kw*out_channels))), bias = 0
    #   LayerNorm: weight = 1, bias = 0
    fan_out = patch_size * patch_size * embed_dim
    conv_w = jax.random.normal(
        k_w, (embed_dim, C, patch_size, patch_size), dtype=jnp.float32
    ) * math.sqrt(2.0 / fan_out)
    conv_b = jnp.zeros((embed_dim,), dtype=jnp.float32)
    ln_g = jnp.ones((embed_dim,), dtype=jnp.float32)
    ln_b = jnp.zeros((embed_dim,), dtype=jnp.float32)

    out, Ho, Wo = overlap_patch_embed(
        x, conv_w, conv_b, ln_g, ln_b, patch_size=patch_size, stride=stride
    )
    jax.block_until_ready(out)
    assert out.shape == (B, Ho * Wo, embed_dim), out.shape

    # Numerical sanity vs. XLA conv + LN reference (bf16 matmul + bf16 store
    # -> loose tolerance; use_bf16=False gives the tight-parity path).
    ref, rHo, rWo = _reference(x, conv_w, conv_b, ln_g, ln_b,
                               patch_size=patch_size, stride=stride)
    assert (Ho, Wo) == (rHo, rWo)
    max_err = float(jnp.max(jnp.abs(out.astype(jnp.float32) - ref)))
    assert max_err < 5e-2, f"max abs error vs reference: {max_err}"

    print("KERNEL_OK")
</pallas_src>

<mosaic_0001>
module attributes {stable_mosaic.version = 11 : i64} {
  func.func @_patch_embed_ln_kernel(%arg0: i32, %arg1: memref<8x2048xbf16, #tpu.memory_space<vmem>>, %arg2: memref<2048x256xbf16, #tpu.memory_space<vmem>>, %arg3: memref<256x256xf32, #tpu.memory_space<vmem>>, %arg4: memref<1x256xf32, #tpu.memory_space<vmem>>, %arg5: memref<1x256xf32, #tpu.memory_space<vmem>>, %arg6: memref<8x256xbf16, #tpu.memory_space<vmem>>) attributes {dimension_semantics = [#tpu.dimension_semantics<parallel>], iteration_bounds = array<i64: 1>, scalar_prefetch = 0 : i64, scratch_operands = 0 : i64, tpu.core_type = #tpu.core_type<tc>, window_params = [{transform_indices = @transform_0, window_bounds = array<i64: 8, 2048>}, {pipeline_mode = #tpu.pipeline_mode<synchronous>, transform_indices = @transform_1, window_bounds = array<i64: 2048, 256>}, {pipeline_mode = #tpu.pipeline_mode<synchronous>, transform_indices = @transform_2, window_bounds = array<i64: 256, 256>}, {pipeline_mode = #tpu.pipeline_mode<synchronous>, transform_indices = @transform_3, window_bounds = array<i64: 1, 256>}, {pipeline_mode = #tpu.pipeline_mode<synchronous>, transform_indices = @transform_4, window_bounds = array<i64: 1, 256>}, {transform_indices = @transform_5, window_bounds = array<i64: 8, 256>}]} {
    %c0 = arith.constant 0 : index
    %c0_0 = arith.constant 0 : index
    %0 = vector.load %arg1[%c0, %c0_0] : memref<8x2048xbf16, #tpu.memory_space<vmem>>, vector<8x2048xbf16>
    %c0_1 = arith.constant 0 : index
    %c0_2 = arith.constant 0 : index
    %1 = vector.load %arg2[%c0_1, %c0_2] : memref<2048x256xbf16, #tpu.memory_space<vmem>>, vector<2048x256xbf16>
    %cst = arith.constant dense<0.000000e+00> : vector<8x256xf32>
    %2 = tpu.matmul %0, %1, %cst {dimension_numbers = #tpu.dot_dimension_numbers<[1], [0], [0], [1], [0, 0, 1, 1], [], []>} : vector<8x2048xbf16>, vector<2048x256xbf16>, vector<8x256xf32> -> vector<8x256xf32>
    %c0_3 = arith.constant 0 : index
    %c0_4 = arith.constant 0 : index
    %3 = vector.load %arg3[%c0_3, %c0_4] : memref<256x256xf32, #tpu.memory_space<vmem>>, vector<256x256xf32>
    %cst_5 = arith.constant dense<0.000000e+00> : vector<8x256xf32>
    %4 = tpu.matmul %2, %3, %cst_5 {dimension_numbers = #tpu.dot_dimension_numbers<[1], [0], [0], [1], [0, 0, 1, 1], [], []>} : vector<8x256xf32>, vector<256x256xf32>, vector<8x256xf32> -> vector<8x256xf32>
    %5 = arith.subf %2, %4 : vector<8x256xf32>
    %6 = arith.mulf %5, %5 : vector<8x256xf32>
    %cst_6 = arith.constant dense<0.000000e+00> : vector<8x256xf32>
    %7 = tpu.matmul %6, %3, %cst_6 {dimension_numbers = #tpu.dot_dimension_numbers<[1], [0], [0], [1], [0, 0, 1, 1], [], []>} : vector<8x256xf32>, vector<256x256xf32>, vector<8x256xf32> -> vector<8x256xf32>
    %cst_7 = arith.constant 9.99999974E-6 : f32
    %8 = vector.broadcast %cst_7 : f32 to vector<8x256xf32>
    %9 = arith.addf %7, %8 : vector<8x256xf32>
    %10 = math.rsqrt %9 : vector<8x256xf32>
    %11 = arith.mulf %5, %10 : vector<8x256xf32>
    %c0_8 = arith.constant 0 : index
    %c0_9 = arith.constant 0 : index
    %12 = vector.load %arg4[%c0_8, %c0_9] : memref<1x256xf32, #tpu.memory_space<vmem>>, vector<1x256xf32>
    %13 = vector.broadcast %12 : vector<1x256xf32> to vector<8x256xf32>
    %14 = arith.mulf %11, %13 : vector<8x256xf32>
    %c0_10 = arith.constant 0 : index
    %c0_11 = arith.constant 0 : index
    %15 = vector.load %arg5[%c0_10, %c0_11] : memref<1x256xf32, #tpu.memory_space<vmem>>, vector<1x256xf32>
    %16 = vector.broadcast %15 : vector<1x256xf32> to vector<8x256xf32>
    %17 = arith.addf %14, %16 : vector<8x256xf32>
    %18 = arith.truncf %17 : vector<8x256xf32> to vector<8x256xbf16>
    %c0_12 = arith.constant 0 : index
    %c0_13 = arith.constant 0 : index
    %19 = vector.load %arg6[%c0_12, %c0_13] : memref<8x256xbf16, #tpu.memory_space<vmem>>, vector<8x256xbf16>
    tpu.vector_store %arg6[%c0_12, %c0_13], %18 {strides = array<i32>} : memref<8x256xbf16, #tpu.memory_space<vmem>>, vector<8x256xbf16>,
    return
  }
  func.func @transform_0(%arg0: i32) -> (i32, i32) {
    %c0_i32 = arith.constant 0 : i32
    %c0_i32_0 = arith.constant 0 : i32
    return %arg0, %c0_i32 : i32, i32
  }
  func.func @transform_1(%arg0: i32) -> (i32, i32) {
    %c0_i32 = arith.constant 0 : i32
    %c0_i32_0 = arith.constant 0 : i32
    %c0_i32_1 = arith.constant 0 : i32
    return %c0_i32, %c0_i32_0 : i32, i32
  }
  func.func @transform_2(%arg0: i32) -> (i32, i32) {
    %c0_i32 = arith.constant 0 : i32
    %c0_i32_0 = arith.constant 0 : i32
    %c0_i32_1 = arith.constant 0 : i32
    return %c0_i32, %c0_i32_0 : i32, i32
  }
  func.func @transform_3(%arg0: i32) -> (i32, i32) {
    %c0_i32 = arith.constant 0 : i32
    %c0_i32_0 = arith.constant 0 : i32
    %c0_i32_1 = arith.constant 0 : i32
    return %c0_i32, %c0_i32_0 : i32, i32
  }
  func.func @transform_4(%arg0: i32) -> (i32, i32) {
    %c0_i32 = arith.constant 0 : i32
    %c0_i32_0 = arith.constant 0 : i32
    %c0_i32_1 = arith.constant 0 : i32
    return %c0_i32, %c0_i32_0 : i32, i32
  }
  func.func @transform_5(%arg0: i32) -> (i32, i32) {
    %c0_i32 = arith.constant 0 : i32
    %c0_i32_0 = arith.constant 0 : i32
    return %arg0, %c0_i32 : i32, i32
  }
}

</mosaic_0001>

<bundles_post_ra>
// kernel: tile.13
= control target key start
LH: loop header
LB: loop body
LE: loop exit
PB: predicated region body
PF: predicated region fallthrough
CT: control target
= control target key end

     0   :  { %s22_s0 = inlined_call_operand.vmem [shape: f32[32], index: 0, kind: input, shape index: {}]   ;;  %s23_s1 = inlined_call_operand.vmem [shape: f32[8,32], index: 1, kind: output, shape index: {}]  }
   0x1   :  { %v4_v0 = vld [vmem:[%s22_s0] ss:$0 sm:$0xff] }
   0x2   :  { %5 = vst [vmem:[%s23_s1] sm:$0xff] %v4_v0 }

// kernel: tile.14
= control target key start
LH: loop header
LB: loop body
LE: loop exit
PB: predicated region body
PF: predicated region fallthrough
CT: control target
= control target key end

     0   :  { %s7_s6 = smov 3  ;;  %s14_s9 = smov 3  ;;  %vm4_vm0 = vcmask 261120   ;;  %vm11_vm1 = vcmask 1048320   ;;  %vm18_vm2 = vcmask 785920   ;;  %vm25_vm3 = vcmask 523520   ;;  %s76_s0 = inlined_call_operand.vmem [shape: f32[8,32], index: 0, kind: input, shape index: {}]   ;;  %s77_s1 = inlined_call_operand.vmem [shape: f32[1,256], index: 1, kind: output, shape index: {}]  }
   0x1   :  { %v38_v0 = vld [vmem:[%s76_s0 + $0x3] ss:$4 sm:%s7_s6]   ;;  %s45_s10 = smov 96   ;;  %s21_s11 = smov 3  ;;  %v39_v1 = vld [vmem:[%s76_s0 + $0x2] ss:$4 sm:%s14_s9]  }
   0x2   :  { %9 = vrot.lane.b32.xlu0 %v38_v0, %s45_s10  ;;  %v40_v2 = vld [vmem:[%s76_s0 + $0x1] ss:$4 sm:%s21_s11]   ;;  %s2_s16 = smov 3  ;;  %s46_s17 = smov 32  }
   0x3   :  { %23 = vrot.lane.b32.xlu1 %v40_v2, %s46_s17  ;;  %v3_v3 = vld [vmem:[%s76_s0] ss:$4 sm:%s2_s16]   ;;  %s47_s0 = smov 64  }
   0x4   :  { %5 = vst.msk [vmem:[#allocation0] ss:$8 sm:$0x3] %vm4_vm0, %v3_v3  }
   0x6   :  { %16 = vrot.lane.b32.xlu0 %v39_v1, %s47_s0 }
  0x74   :  { %v10_v4 = vpop.permute.xlu0 %9  }
  0x75   :  { %12 = vst.msk [vmem:[#allocation0] ss:$8 sm:$0x3] %vm11_vm1, %v10_v4   ;;  %v24_v5 = vpop.permute.xlu1 %23  }
  0x78   :  { %v17_v6 = vpop.permute.xlu0 %16  }
  0x79   :  { %19 = vst.msk [vmem:[#allocation0] ss:$8 sm:$0x3] %vm18_vm2, %v17_v6  }
  0x7a   :  { %26 = vst.msk [vmem:[#allocation0] ss:$8 sm:$0x3] %vm25_vm3, %v24_v5  }
  0x81   :  { %v30_v7 = vld [vmem:[#allocation0] sm:$0x1]  ;;  %v34_v8 = vld [vmem:[#allocation0 + $0x8] sm:$0x1] }
  0x82   :  { %32 = vst [vmem:[%s77_s1] sm:$0x1] %v30_v7  ;;  %41 = vst [vmem:[%s77_s1 + $0x1] sm:$0x1] %v34_v8 }

// kernel: _overlap_patch_embed_impl.1
= control target key start
LH: loop header
LB: loop body
LE: loop exit
PB: predicated region body
PF: predicated region fallthrough
CT: control target
= control target key end

     0   :  { %s4194_s1 = inlined_call_operand.vmem [shape: bf16[2048,256], index: 1, kind: input, shape index: {}]   ;;  %s4195_s0 = inlined_call_operand.vmem [shape: bf16[8,2048], index: 0, kind: input, shape index: {}]   ;;  %s4196_s2 = inlined_call_operand.vmem [shape: f32[256,256], index: 2, kind: input, shape index: {}]   ;;  %s4197_s3 = inlined_call_operand.vmem [shape: f32[1,256], index: 3, kind: input, shape index: {}]   ;;  %s4198_s4 = inlined_call_operand.vmem [shape: f32[1,256], index: 4, kind: input, shape index: {}]   ;;  %s4199_s5 = inlined_call_operand.vmem [shape: bf16[8,256], index: 5, kind: output, shape index: {}]  }
   0x1   :  { %v2631_v0 = vld [vmem:[%s4194_s1 + $0x4] ss:$8 sps:$4 sm:$0xff]   ;;  %v2635_v2 = vld [vmem:[%s4194_s1] ss:$8 sps:$4 sm:$0xff]   ;;  %v2637_v4 = vld [vmem:[%s4194_s1 + $0x14] ss:$8 sps:$4 sm:$0xff]  }
   0x2   :  { %v2633_v1 = vld [vmem:[%s4194_s1 + $0x304] ss:$8 sps:$4 sm:$0xff]   ;;  %1620 = vmatprep.subr.bf16.mxu1 %v2631_v0  ;;  %v2636_v3 = vld [vmem:[%s4194_s1 + $0x300] ss:$8 sps:$4 sm:$0xff]   ;;  %v2639_v5 = vld [vmem:[%s4194_s1 + $0x314] ss:$8 sps:$4 sm:$0xff]  }
   0x3   :  { %1743 = vmatprep.subr.bf16.mxu0 %v2633_v1  ;;  %1621 = vmatpush1.bf16.msra.mxu1 %v2635_v2  ;;  %v2641_v6 = vld [vmem:[%s4194_s1 + $0x10] ss:$8 sps:$4 sm:$0xff]   ;;  %v2643_v8 = vld [vmem:[%s4194_s1 + $0x24] ss:$8 sps:$4 sm:$0xff]   ;;  %v2647_v10 = vld [vmem:[%s4194_s1 + $0x20] ss:$8 sps:$4 sm:$0xff]  }
   0x4   :  { %1744 = vmatpush1.bf16.msra.mxu0 %v2636_v3  ;;  %1622 = vmatprep.subr.bf16.mxu1 %v2637_v4  ;;  %v2642_v7 = vld [vmem:[%s4194_s1 + $0x310] ss:$8 sps:$4 sm:$0xff]   ;;  %v2645_v9 = vld [vmem:[%s4194_s1 + $0x324] ss:$8 sps:$4 sm:$0xff]   ;;  %v2648_v11 = vld [vmem:[%s4194_s1 + $0x320] ss:$8 sps:$4 sm:$0xff]  }
   0x5   :  { %1745 = vmatprep.subr.bf16.mxu0 %v2639_v5  ;;  %v2649_v12 = vld [vmem:[%s4194_s1 + $0x34] ss:$8 sps:$4 sm:$0xff]   ;;  %v2653_v14 = vld [vmem:[%s4194_s1 + $0x30] ss:$8 sps:$4 sm:$0xff]   ;;  %v2655_v16 = vld [vmem:[%s4194_s1 + $0x44] ss:$8 sps:$4 sm:$0xff]  }
   0x6   :  { %v2651_v13 = vld [vmem:[%s4194_s1 + $0x334] ss:$8 sps:$4 sm:$0xff]   ;;  %v2654_v15 = vld [vmem:[%s4194_s1 + $0x330] ss:$8 sps:$4 sm:$0xff]   ;;  %v2657_v17 = vld [vmem:[%s4194_s1 + $0x344] ss:$8 sps:$4 sm:$0xff]  }
   0x7   :  { %1623 = vmatpush1.bf16.msra.mxu1 %v2641_v6  ;;  %v2659_v18 = vld [vmem:[%s4194_s1 + $0x40] ss:$8 sps:$4 sm:$0xff]   ;;  %v2661_v20 = vld [vmem:[%s4194_s1 + $0x54] ss:$8 sps:$4 sm:$0xff]   ;;  %v2665_v22 = vld [vmem:[%s4194_s1 + $0x50] ss:$8 sps:$4 sm:$0xff]  }
   0x8   :  { %1746 = vmatpush1.bf16.msra.mxu0 %v2642_v7  ;;  %1624 = vmatprep.subr.bf16.mxu1 %v2643_v8  ;;  %v2660_v19 = vld [vmem:[%s4194_s1 + $0x340] ss:$8 sps:$4 sm:$0xff]   ;;  %v2663_v21 = vld [vmem:[%s4194_s1 + $0x354] ss:$8 sps:$4 sm:$0xff]   ;;  %v2666_v23 = vld [vmem:[%s4194_s1 + $0x350] ss:$8 sps:$4 sm:$0xff]  }
   0x9   :  { %1747 = vmatprep.subr.bf16.mxu0 %v2645_v9  ;;  %v2667_v24 = vld [vmem:[%s4194_s1 + $0x64] ss:$8 sps:$4 sm:$0xff]   ;;  %v2671_v26 = vld [vmem:[%s4194_s1 + $0x60] ss:$8 sps:$4 sm:$0xff]   ;;  %v2673_v28 = vld [vmem:[%s4194_s1 + $0x74] ss:$8 sps:$4 sm:$0xff]  }
   0xa   :  { %v2669_v25 = vld [vmem:[%s4194_s1 + $0x364] ss:$8 sps:$4 sm:$0xff]   ;;  %v2672_v27 = vld [vmem:[%s4194_s1 + $0x360] ss:$8 sps:$4 sm:$0xff]   ;;  %v2675_v29 = vld [vmem:[%s4194_s1 + $0x374] ss:$8 sps:$4 sm:$0xff]  }
   0xb   :  { %1625 = vmatpush1.bf16.msra.mxu1 %v2647_v10  ;;  %v2677_v30 = vld [vmem:[%s4194_s1 + $0x70] ss:$8 sps:$4 sm:$0xff]   ;;  %v2679_v32 = vld [vmem:[%s4194_s1 + $0x84] ss:$8 sps:$4 sm:$0xff]   ;;  %v2683_v34 = vld [vmem:[%s4194_s1 + $0x80] ss:$8 sps:$4 sm:$0xff]  }
   0xc   :  { %1748 = vmatpush1.bf16.msra.mxu0 %v2648_v11  ;;  %1626 = vmatprep.subr.bf16.mxu1 %v2649_v12  ;;  %v2678_v31 = vld [vmem:[%s4194_s1 + $0x370] ss:$8 sps:$4 sm:$0xff]   ;;  %v2681_v33 = vld [vmem:[%s4194_s1 + $0x384] ss:$8 sps:$4 sm:$0xff]   ;;  %v2684_v35 = vld [vmem:[%s4194_s1 + $0x380] ss:$8 sps:$4 sm:$0xff]  }
   0xd   :  { %1749 = vmatprep.subr.bf16.mxu0 %v2651_v13  ;;  %v2685_v36 = vld [vmem:[%s4194_s1 + $0x94] ss:$8 sps:$4 sm:$0xff]   ;;  %v2689_v38 = vld [vmem:[%s4194_s1 + $0x90] ss:$8 sps:$4 sm:$0xff]   ;;  %v2691_v40 = vld [vmem:[%s4194_s1 + $0xa4] ss:$8 sps:$4 sm:$0xff]  }
   0xe   :  { %v2687_v37 = vld [vmem:[%s4194_s1 + $0x394] ss:$8 sps:$4 sm:$0xff]   ;;  %v2690_v39 = vld [vmem:[%s4194_s1 + $0x390] ss:$8 sps:$4 sm:$0xff]   ;;  %v2693_v41 = vld [vmem:[%s4194_s1 + $0x3a4] ss:$8 sps:$4 sm:$0xff]  }
   0xf   :  { %1627 = vmatpush1.bf16.msra.mxu1 %v2653_v14  ;;  %v2695_v42 = vld [vmem:[%s4194_s1 + $0xa0] ss:$8 sps:$4 sm:$0xff]   ;;  %v2697_v44 = vld [vmem:[%s4194_s1 + $0xb4] ss:$8 sps:$4 sm:$0xff]   ;;  %v2701_v47 = vld [vmem:[%s4194_s1 + $0xb0] ss:$8 sps:$4 sm:$0xff]  }
  0x10   :  { %1750 = vmatpush1.bf16.msra.mxu0 %v2654_v15  ;;  %1628 = vmatprep.subr.bf16.mxu1 %v2655_v16  ;;  %v2696_v43 = vld [vmem:[%s4194_s1 + $0x3a0] ss:$8 sps:$4 sm:$0xff]   ;;  %v2699_v45 = vld [vmem:[%s4194_s1 + $0x3b4] ss:$8 sps:$4 sm:$0xff]   ;;  %v2702_v49 = vld [vmem:[%s4194_s1 + $0x3b0] ss:$8 sps:$4 sm:$0xff]  }
  0x11   :  { %1751 = vmatprep.subr.bf16.mxu0 %v2657_v17  ;;  %v20_v46 = vld [vmem:[%s4195_s0] sm:$0xff]  ;;  %v23_v50 = vld [vmem:[%s4195_s0 + $0x18] sm:$0xff] }
  0x12   :  { %v2204_v48 = vcombine.high %v20_v46, %v20_v46  ;;  %v2703_v51 = vld [vmem:[%s4194_s1 + $0xc4] ss:$8 sps:$4 sm:$0xff]   ;;  %v2210_v53 = vcombine.high %v23_v50, %v23_v50  ;;  %v2707_v54 = vld [vmem:[%s4194_s1 + $0xc0] ss:$8 sps:$4 sm:$0xff]   ;;  %v2709_v56 = vld [vmem:[%s4194_s1 + $0xd4] ss:$8 sps:$4 sm:$0xff]   ;;  %v2203_v6 = vcombine.low %v20_v46, %v20_v46  ;;  %v2209_v7 = vcombine.low %v23_v50, %v23_v50 }
  0x13   :  { %1629 = vmatpush1.bf16.msra.mxu1 %v2659_v18  ;;  %v2705_v52 = vld [vmem:[%s4194_s1 + $0x3c4] ss:$8 sps:$4 sm:$0xff]   ;;  %v2708_v55 = vld [vmem:[%s4194_s1 + $0x3c0] ss:$8 sps:$4 sm:$0xff]   ;;  %v2711_v57 = vld [vmem:[%s4194_s1 + $0x3d4] ss:$8 sps:$4 sm:$0xff]  }
  0x14   :  { %1752 = vmatpush1.bf16.msra.mxu0 %v2660_v19  ;;  %1630 = vmatprep.subr.bf16.mxu1 %v2661_v20  ;;  %v2713_v58 = vld [vmem:[%s4194_s1 + $0xd0] ss:$8 sps:$4 sm:$0xff]   ;;  %v2715_v60 = vld [vmem:[%s4194_s1 + $0xe4] ss:$8 sps:$4 sm:$0xff]   ;;  %v2719_v62 = vld [vmem:[%s4194_s1 + $0xe0] ss:$8 sps:$4 sm:$0xff]  }
  0x15   :  { %1753 = vmatprep.subr.bf16.mxu0 %v2663_v21  ;;  %1652 = vmatprep.mubr.bf16.mxu1 %v2204_v48  ;;  %v2714_v59 = vld [vmem:[%s4194_s1 + $0x3d0] ss:$8 sps:$4 sm:$0xff]   ;;  %v2717_v61 = vld [vmem:[%s4194_s1 + $0x3e4] ss:$8 sps:$4 sm:$0xff]   ;;  %v2720_v63 = vld [vmem:[%s4194_s1 + $0x3e0] ss:$8 sps:$4 sm:$0xff]  }
  0x16   :  { %1775 = vmatprep.mubr.bf16.mxu0 %v2210_v53  ;;  %v2721_v0 = vld [vmem:[%s4194_s1 + $0xf4] ss:$8 sps:$4 sm:$0xff]   ;;  %v2725_v2 = vld [vmem:[%s4194_s1 + $0xf0] ss:$8 sps:$4 sm:$0xff]   ;;  %v2731_v4 = vld [vmem:[%s4194_s1 + $0x104] ss:$8 sps:$4 sm:$0xff]  }
  0x17   :  { %1631 = vmatpush1.bf16.msra.mxu1 %v2665_v22  ;;  %v2723_v1 = vld [vmem:[%s4194_s1 + $0x3f4] ss:$8 sps:$4 sm:$0xff]   ;;  %v2726_v3 = vld [vmem:[%s4194_s1 + $0x3f0] ss:$8 sps:$4 sm:$0xff]   ;;  %v2736_v5 = vld [vmem:[%s4194_s1 + $0x404] ss:$8 sps:$4 sm:$0xff]  }
  0x18   :  { %1754 = vmatpush1.bf16.msra.mxu0 %v2666_v23  ;;  %1632 = vmatprep.subr.bf16.mxu1 %v2667_v24  ;;  %v2729_v8 = vld [vmem:[%s4194_s1 + $0x100] ss:$8 sps:$4 sm:$0xff]   ;;  %v2739_v10 = vld [vmem:[%s4194_s1 + $0x114] ss:$8 sps:$4 sm:$0xff]   ;;  %v2737_v12 = vld [vmem:[%s4194_s1 + $0x110] ss:$8 sps:$4 sm:$0xff]  }
  0x19   :  { %1755 = vmatprep.subr.bf16.mxu0 %v2669_v25  ;;  %v2734_v9 = vld [vmem:[%s4194_s1 + $0x400] ss:$8 sps:$4 sm:$0xff]   ;;  %v2742_v11 = vld [vmem:[%s4194_s1 + $0x414] ss:$8 sps:$4 sm:$0xff]   ;;  %v2740_v13 = vld [vmem:[%s4194_s1 + $0x410] ss:$8 sps:$4 sm:$0xff]  }
  0x1a   :  { %v2745_v14 = vld [vmem:[%s4194_s1 + $0x124] ss:$8 sps:$4 sm:$0xff]   ;;  %v2743_v16 = vld [vmem:[%s4194_s1 + $0x120] ss:$8 sps:$4 sm:$0xff]   ;;  %v2751_v18 = vld [vmem:[%s4194_s1 + $0x134] ss:$8 sps:$4 sm:$0xff]  }
  0x1b   :  { %1633 = vmatpush1.bf16.msra.mxu1 %v2671_v26  ;;  %v2748_v15 = vld [vmem:[%s4194_s1 + $0x424] ss:$8 sps:$4 sm:$0xff]   ;;  %v2746_v17 = vld [vmem:[%s4194_s1 + $0x420] ss:$8 sps:$4 sm:$0xff]   ;;  %v2754_v19 = vld [vmem:[%s4194_s1 + $0x434] ss:$8 sps:$4 sm:$0xff]  }
  0x1c   :  { %1756 = vmatpush1.bf16.msra.mxu0 %v2672_v27  ;;  %1634 = vmatprep.subr.bf16.mxu1 %v2673_v28  ;;  %v2749_v20 = vld [vmem:[%s4194_s1 + $0x130] ss:$8 sps:$4 sm:$0xff]   ;;  %v2757_v22 = vld [vmem:[%s4194_s1 + $0x144] ss:$8 sps:$4 sm:$0xff]   ;;  %v2755_v24 = vld [vmem:[%s4194_s1 + $0x140] ss:$8 sps:$4 sm:$0xff]  }
  0x1d   :  { %1757 = vmatprep.subr.bf16.mxu0 %v2675_v29  ;;  %v2752_v21 = vld [vmem:[%s4194_s1 + $0x430] ss:$8 sps:$4 sm:$0xff]   ;;  %v2760_v23 = vld [vmem:[%s4194_s1 + $0x444] ss:$8 sps:$4 sm:$0xff]   ;;  %v2758_v25 = vld [vmem:[%s4194_s1 + $0x440] ss:$8 sps:$4 sm:$0xff]  }
  0x1e   :  { %v2763_v26 = vld [vmem:[%s4194_s1 + $0x154] ss:$8 sps:$4 sm:$0xff]   ;;  %v2761_v28 = vld [vmem:[%s4194_s1 + $0x150] ss:$8 sps:$4 sm:$0xff]   ;;  %v2793_v50 = vld [vmem:[%s4194_s1 + $0x1a4] ss:$8 sps:$4 sm:$0xff]  }
  0x1f   :  { %1635 = vmatpush1.bf16.msra.mxu1 %v2677_v30  ;;  %v2766_v27 = vld [vmem:[%s4194_s1 + $0x454] ss:$8 sps:$4 sm:$0xff]   ;;  %v2764_v29 = vld [vmem:[%s4194_s1 + $0x450] ss:$8 sps:$4 sm:$0xff]   ;;  %v2769_v30 = vld [vmem:[%s4194_s1 + $0x164] ss:$8 sps:$4 sm:$0xff]  }
  0x20   :  { %1758 = vmatpush1.bf16.msra.mxu0 %v2678_v31  ;;  %1636 = vmatprep.subr.bf16.mxu1 %v2679_v32  ;;  %v2772_v31 = vld [vmem:[%s4194_s1 + $0x464] ss:$8 sps:$4 sm:$0xff]   ;;  %v2787_v46 = vld [vmem:[%s4194_s1 + $0x194] ss:$8 sps:$4 sm:$0xff]   ;;  %v2785_v48 = vld [vmem:[%s4194_s1 + $0x190] ss:$8 sps:$4 sm:$0xff]  }
  0x21   :  { %1759 = vmatprep.subr.bf16.mxu0 %v2681_v33  ;;  %v3344_v32 = vld [vmem:[%s4195_s0 + $0x8] sm:$0xff] }
  0x22   :  { %v2767_v33 = vld [vmem:[%s4194_s1 + $0x160] ss:$8 sps:$4 sm:$0xff]  }
  0x23   :  { %1637 = vmatpush1.bf16.msra.mxu1 %v2683_v34  ;;  %v2770_v34 = vld [vmem:[%s4194_s1 + $0x460] ss:$8 sps:$4 sm:$0xff]  }
  0x24   :  { %1760 = vmatpush1.bf16.msra.mxu0 %v2684_v35  ;;  %1638 = vmatprep.subr.bf16.mxu1 %v2685_v36  ;;  %v2206_v35 = vcombine.high %v3344_v32, %v3344_v32  ;;  %v3357_v36 = vld [vmem:[%s4195_s0 + $0x20] sm:$0xff] }
  0x25   :  { %1761 = vmatprep.subr.bf16.mxu0 %v2687_v37  ;;  %v2775_v37 = vld [vmem:[%s4194_s1 + $0x174] ss:$8 sps:$4 sm:$0xff]   ;;  %v2794_v53 = vld [vmem:[%s4194_s1 + $0x4a0] ss:$8 sps:$4 sm:$0xff]  }
  0x27   :  { %1639 = vmatpush1.bf16.msra.mxu1 %v2689_v38  ;;  %v2212_v38 = vcombine.high %v3357_v36, %v3357_v36 }
  0x28   :  { %1762 = vmatpush1.bf16.msra.mxu0 %v2690_v39  ;;  %1640 = vmatprep.subr.bf16.mxu1 %v2691_v40  ;;  %v2778_v39 = vld [vmem:[%s4194_s1 + $0x474] ss:$8 sps:$4 sm:$0xff]   ;;  %v2773_v40 = vld [vmem:[%s4194_s1 + $0x170] ss:$8 sps:$4 sm:$0xff]  }
  0x29   :  { %1763 = vmatprep.subr.bf16.mxu0 %v2693_v41  ;;  %v2776_v41 = vld [vmem:[%s4194_s1 + $0x470] ss:$8 sps:$4 sm:$0xff]  }
  0x2b   :  { %1641 = vmatpush1.bf16.msra.mxu1 %v2695_v42  ;;  %v2781_v42 = vld [vmem:[%s4194_s1 + $0x184] ss:$8 sps:$4 sm:$0xff]  }
  0x2c   :  { %1764 = vmatpush1.bf16.msra.mxu0 %v2696_v43  ;;  %1642 = vmatprep.subr.bf16.mxu1 %v2697_v44  ;;  %v2784_v43 = vld [vmem:[%s4194_s1 + $0x484] ss:$8 sps:$4 sm:$0xff]   ;;  %v2779_v44 = vld [vmem:[%s4194_s1 + $0x180] ss:$8 sps:$4 sm:$0xff]  }
  0x2d   :  { %1765 = vmatprep.subr.bf16.mxu0 %v2699_v45  ;;  %v2782_v45 = vld [vmem:[%s4194_s1 + $0x480] ss:$8 sps:$4 sm:$0xff]  }
  0x2f   :  { %1643 = vmatpush1.bf16.msra.mxu1 %v2701_v47  ;;  %v2790_v47 = vld [vmem:[%s4194_s1 + $0x494] ss:$8 sps:$4 sm:$0xff]  }
  0x30   :  { %1766 = vmatpush1.bf16.msra.mxu0 %v2702_v49  ;;  %1644 = vmatprep.subr.bf16.mxu1 %v2703_v51  ;;  %v2788_v49 = vld [vmem:[%s4194_s1 + $0x490] ss:$8 sps:$4 sm:$0xff]   ;;  %v2796_v51 = vld [vmem:[%s4194_s1 + $0x4a4] ss:$8 sps:$4 sm:$0xff]  }
  0x31   :  { %1767 = vmatprep.subr.bf16.mxu0 %v2705_v52  ;;  %v2791_v52 = vld [vmem:[%s4194_s1 + $0x1a0] ss:$8 sps:$4 sm:$0xff]  }
  0x33   :  { %1645 = vmatpush1.bf16.msra.mxu1 %v2707_v54  ;;  %v2799_v54 = vld [vmem:[%s4194_s1 + $0x1b4] ss:$8 sps:$4 sm:$0xff]  }
  0x34   :  { %1768 = vmatpush1.bf16.msra.mxu0 %v2708_v55  ;;  %1646 = vmatprep.subr.bf16.mxu1 %v2709_v56  ;;  %v2802_v55 = vld [vmem:[%s4194_s1 + $0x4b4] ss:$8 sps:$4 sm:$0xff]   ;;  %v2797_v56 = vld [vmem:[%s4194_s1 + $0x1b0] ss:$8 sps:$4 sm:$0xff]  }
  0x35   :  { %1769 = vmatprep.subr.bf16.mxu0 %v2711_v57  ;;  %v2800_v57 = vld [vmem:[%s4194_s1 + $0x4b0] ss:$8 sps:$4 sm:$0xff]  }
  0x37   :  { %1647 = vmatpush1.bf16.msra.mxu1 %v2713_v58  ;;  %v2805_v58 = vld [vmem:[%s4194_s1 + $0x1c4] ss:$8 sps:$4 sm:$0xff]  }
  0x38   :  { %1770 = vmatpush1.bf16.msra.mxu0 %v2714_v59  ;;  %1648 = vmatprep.subr.bf16.mxu1 %v2715_v60  ;;  %v2808_v59 = vld [vmem:[%s4194_s1 + $0x4c4] ss:$8 sps:$4 sm:$0xff]   ;;  %v2803_v60 = vld [vmem:[%s4194_s1 + $0x1c0] ss:$8 sps:$4 sm:$0xff]  }
  0x39   :  { %1771 = vmatprep.subr.bf16.mxu0 %v2717_v61  ;;  %v2806_v61 = vld [vmem:[%s4194_s1 + $0x4c0] ss:$8 sps:$4 sm:$0xff]  }
  0x3b   :  { %1649 = vmatpush1.bf16.msra.mxu1 %v2719_v62  ;;  %v2811_v62 = vld [vmem:[%s4194_s1 + $0x1d4] ss:$8 sps:$4 sm:$0xff]  }
  0x3c   :  { %1772 = vmatpush1.bf16.msra.mxu0 %v2720_v63  ;;  %1650 = vmatprep.subr.bf16.mxu1 %v2721_v0  ;;  %v2814_v63 = vld [vmem:[%s4194_s1 + $0x4d4] ss:$8 sps:$4 sm:$0xff]   ;;  %v2809_v0 = vld [vmem:[%s4194_s1 + $0x1d0] ss:$8 sps:$4 sm:$0xff]  }
  0x3d   :  { %1773 = vmatprep.subr.bf16.mxu0 %v2723_v1  ;;  %v2812_v1 = vld [vmem:[%s4194_s1 + $0x4d0] ss:$8 sps:$4 sm:$0xff]  }
  0x3f   :  { %1651 = vmatpush1.bf16.msra.mxu1 %v2725_v2  ;;  %v2817_v2 = vld [vmem:[%s4194_s1 + $0x1e4] ss:$8 sps:$4 sm:$0xff]  }
  0x40   :  { %1774 = vmatpush1.bf16.msra.mxu0 %v2726_v3  ;;  %1661 = vmatprep.subr.bf16.mxu1 %v2731_v4  ;;  %v2820_v3 = vld [vmem:[%s4194_s1 + $0x4e4] ss:$8 sps:$4 sm:$0xff]   ;;  %v2815_v4 = vld [vmem:[%s4194_s1 + $0x1e0] ss:$8 sps:$4 sm:$0xff]  }
  0x41   :  { %1784 = vmatprep.subr.bf16.mxu0 %v2736_v5  ;;  %v2818_v5 = vld [vmem:[%s4194_s1 + $0x4e0] ss:$8 sps:$4 sm:$0xff]  }
  0x42   :  { %1653 = vmatmul.mubr.bf16.vlgmr.msra.gmra.mrb[0].mxu1 %v2203_v6  ;;  %v2823_v6 = vld [vmem:[%s4194_s1 + $0x1f4] ss:$8 sps:$4 sm:$0xff]  }
  0x43   :  { %1776 = vmatmul.mubr.bf16.vlgmr.msra.gmra.mrb[0].mxu0 %v2209_v7  ;;  %1662 = vmatpush1.bf16.msra.mxu1 %v2729_v8  ;;  %v2826_v7 = vld [vmem:[%s4194_s1 + $0x4f4] ss:$8 sps:$4 sm:$0xff]   ;;  %v2821_v8 = vld [vmem:[%s4194_s1 + $0x1f0] ss:$8 sps:$4 sm:$0xff]  }
  0x44   :  { %1785 = vmatpush1.bf16.msra.mxu0 %v2734_v9  ;;  %1663 = vmatprep.subr.bf16.mxu1 %v2739_v10  ;;  %v2824_v9 = vld [vmem:[%s4194_s1 + $0x4f0] ss:$8 sps:$4 sm:$0xff]   ;;  %v2831_v10 = vld [vmem:[%s4194_s1 + $0x204] ss:$8 sps:$4 sm:$0xff]  }
  0x45   :  { %1786 = vmatprep.subr.bf16.mxu0 %v2742_v11  ;;  %1693 = vmatprep.mubr.bf16.mxu1 %v2206_v35  ;;  %v2836_v11 = vld [vmem:[%s4194_s1 + $0x504] ss:$8 sps:$4 sm:$0xff]   ;;  %v2858_v35 = vld [vmem:[%s4194_s1 + $0x540] ss:$8 sps:$4 sm:$0xff]  }
  0x46   :  { %1816 = vmatprep.mubr.bf16.mxu0 %v2212_v38  ;;  %v2861_v38 = vld [vmem:[%s4194_s1 + $0x250] ss:$8 sps:$4 sm:$0xff]  }
  0x47   :  { %1664 = vmatpush1.bf16.msra.mxu1 %v2737_v12  ;;  %v2205_v12 = vcombine.low %v3344_v32, %v3344_v32  ;;  %v2857_v32 = vld [vmem:[%s4194_s1 + $0x244] ss:$8 sps:$4 sm:$0xff]  }
  0x48   :  { %1787 = vmatpush1.bf16.msra.mxu0 %v2740_v13  ;;  %1665 = vmatprep.subr.bf16.mxu1 %v2745_v14  ;;  %v2829_v13 = vld [vmem:[%s4194_s1 + $0x200] ss:$8 sps:$4 sm:$0xff]   ;;  %v2211_v14 = vcombine.low %v3357_v36, %v3357_v36  ;;  %v2863_v36 = vld [vmem:[%s4194_s1 + $0x254] ss:$8 sps:$4 sm:$0xff]  }
  0x49   :  { %1788 = vmatprep.subr.bf16.mxu0 %v2748_v15  ;;  %v2834_v15 = vld [vmem:[%s4194_s1 + $0x500] ss:$8 sps:$4 sm:$0xff]  }
  0x4b   :  { %1666 = vmatpush1.bf16.msra.mxu1 %v2743_v16  ;;  %v2839_v16 = vld [vmem:[%s4194_s1 + $0x214] ss:$8 sps:$4 sm:$0xff]  }
  0x4c   :  { %1789 = vmatpush1.bf16.msra.mxu0 %v2746_v17  ;;  %1667 = vmatprep.subr.bf16.mxu1 %v2751_v18  ;;  %v2842_v17 = vld [vmem:[%s4194_s1 + $0x514] ss:$8 sps:$4 sm:$0xff]  }
  0x4d   :  { %1790 = vmatprep.subr.bf16.mxu0 %v2754_v19  ;;  %v3494_v18 = vld [vmem:[%s4195_s0 + $0x10] sm:$0xff]  ;;  %v3499_v19 = vld [vmem:[%s4195_s0 + $0x28] sm:$0xff] }
  0x4f   :  { %1668 = vmatpush1.bf16.msra.mxu1 %v2749_v20  ;;  %v2208_v20 = vcombine.high %v3494_v18, %v3494_v18 }
  0x50   :  { %1791 = vmatpush1.bf16.msra.mxu0 %v2752_v21  ;;  %1669 = vmatprep.subr.bf16.mxu1 %v2757_v22  ;;  %v2214_v21 = vcombine.high %v3499_v19, %v3499_v19  ;;  %v2837_v22 = vld [vmem:[%s4194_s1 + $0x210] ss:$8 sps:$4 sm:$0xff]  }
  0x51   :  { %1792 = vmatprep.subr.bf16.mxu0 %v2760_v23  ;;  %v2840_v23 = vld [vmem:[%s4194_s1 + $0x510] ss:$8 sps:$4 sm:$0xff]  }
  0x53   :  { %1670 = vmatpush1.bf16.msra.mxu1 %v2755_v24  ;;  %v2845_v24 = vld [vmem:[%s4194_s1 + $0x224] ss:$8 sps:$4 sm:$0xff]  }
  0x54   :  { %1793 = vmatpush1.bf16.msra.mxu0 %v2758_v25  ;;  %1671 = vmatprep.subr.bf16.mxu1 %v2763_v26  ;;  %v2848_v25 = vld [vmem:[%s4194_s1 + $0x524] ss:$8 sps:$4 sm:$0xff]   ;;  %v2843_v26 = vld [vmem:[%s4194_s1 + $0x220] ss:$8 sps:$4 sm:$0xff]  }
  0x55   :  { %1794 = vmatprep.subr.bf16.mxu0 %v2766_v27  ;;  %v2846_v27 = vld [vmem:[%s4194_s1 + $0x520] ss:$8 sps:$4 sm:$0xff]  }
  0x57   :  { %1672 = vmatpush1.bf16.msra.mxu1 %v2761_v28  ;;  %v2851_v28 = vld [vmem:[%s4194_s1 + $0x234] ss:$8 sps:$4 sm:$0xff]  }
  0x58   :  { %1795 = vmatpush1.bf16.msra.mxu0 %v2764_v29  ;;  %1673 = vmatprep.subr.bf16.mxu1 %v2769_v30  ;;  %v2854_v29 = vld [vmem:[%s4194_s1 + $0x534] ss:$8 sps:$4 sm:$0xff]   ;;  %v2849_v30 = vld [vmem:[%s4194_s1 + $0x230] ss:$8 sps:$4 sm:$0xff]  }
  0x59   :  { %1796 = vmatprep.subr.bf16.mxu0 %v2772_v31  ;;  %v2852_v31 = vld [vmem:[%s4194_s1 + $0x530] ss:$8 sps:$4 sm:$0xff]  }
  0x5b   :  { %1674 = vmatpush1.bf16.msra.mxu1 %v2767_v33  ;;  %v2860_v33 = vld [vmem:[%s4194_s1 + $0x544] ss:$8 sps:$4 sm:$0xff]  }
  0x5c   :  { %1797 = vmatpush1.bf16.msra.mxu0 %v2770_v34  ;;  %1675 = vmatprep.subr.bf16.mxu1 %v2775_v37  ;;  %v2855_v34 = vld [vmem:[%s4194_s1 + $0x240] ss:$8 sps:$4 sm:$0xff]   ;;  %v2866_v37 = vld [vmem:[%s4194_s1 + $0x554] ss:$8 sps:$4 sm:$0xff]  }
  0x5d   :  { %1798 = vmatprep.subr.bf16.mxu0 %v2778_v39  ;;  %v2864_v39 = vld [vmem:[%s4194_s1 + $0x550] ss:$8 sps:$4 sm:$0xff]  }
  0x5f   :  { %1676 = vmatpush1.bf16.msra.mxu1 %v2773_v40  ;;  %v2869_v40 = vld [vmem:[%s4194_s1 + $0x264] ss:$8 sps:$4 sm:$0xff]  }
  0x60   :  { %1799 = vmatpush1.bf16.msra.mxu0 %v2776_v41  ;;  %1677 = vmatprep.subr.bf16.mxu1 %v2781_v42  ;;  %v2872_v41 = vld [vmem:[%s4194_s1 + $0x564] ss:$8 sps:$4 sm:$0xff]   ;;  %v2867_v42 = vld [vmem:[%s4194_s1 + $0x260] ss:$8 sps:$4 sm:$0xff]  }
  0x61   :  { %1800 = vmatprep.subr.bf16.mxu0 %v2784_v43  ;;  %v2870_v43 = vld [vmem:[%s4194_s1 + $0x560] ss:$8 sps:$4 sm:$0xff]  }
  0x63   :  { %1678 = vmatpush1.bf16.msra.mxu1 %v2779_v44  ;;  %v2875_v44 = vld [vmem:[%s4194_s1 + $0x274] ss:$8 sps:$4 sm:$0xff]  }
  0x64   :  { %1801 = vmatpush1.bf16.msra.mxu0 %v2782_v45  ;;  %1679 = vmatprep.subr.bf16.mxu1 %v2787_v46  ;;  %v2878_v45 = vld [vmem:[%s4194_s1 + $0x574] ss:$8 sps:$4 sm:$0xff]   ;;  %v2873_v46 = vld [vmem:[%s4194_s1 + $0x270] ss:$8 sps:$4 sm:$0xff]  }
  0x65   :  { %1802 = vmatprep.subr.bf16.mxu0 %v2790_v47  ;;  %v2876_v47 = vld [vmem:[%s4194_s1 + $0x570] ss:$8 sps:$4 sm:$0xff]  }
  0x67   :  { %1680 = vmatpush1.bf16.msra.mxu1 %v2785_v48  ;;  %v2881_v48 = vld [vmem:[%s4194_s1 + $0x284] ss:$8 sps:$4 sm:$0xff]  }
  0x68   :  { %1803 = vmatpush1.bf16.msra.mxu0 %v2788_v49  ;;  %1681 = vmatprep.subr.bf16.mxu1 %v2793_v50  ;;  %v2884_v49 = vld [vmem:[%s4194_s1 + $0x584] ss:$8 sps:$4 sm:$0xff]   ;;  %v2879_v50 = vld [vmem:[%s4194_s1 + $0x280] ss:$8 sps:$4 sm:$0xff]  }
  0x69   :  { %1804 = vmatprep.subr.bf16.mxu0 %v2796_v51  ;;  %v2882_v51 = vld [vmem:[%s4194_s1 + $0x580] ss:$8 sps:$4 sm:$0xff]  }
  0x6b   :  { %1682 = vmatpush1.bf16.msra.mxu1 %v2791_v52  ;;  %v2887_v52 = vld [vmem:[%s4194_s1 + $0x294] ss:$8 sps:$4 sm:$0xff]  }
  0x6c   :  { %1805 = vmatpush1.bf16.msra.mxu0 %v2794_v53  ;;  %1683 = vmatprep.subr.bf16.mxu1 %v2799_v54  ;;  %v2890_v53 = vld [vmem:[%s4194_s1 + $0x594] ss:$8 sps:$4 sm:$0xff]   ;;  %v2885_v54 = vld [vmem:[%s4194_s1 + $0x290] ss:$8 sps:$4 sm:$0xff]  }
  0x6d   :  { %1806 = vmatprep.subr.bf16.mxu0 %v2802_v55  ;;  %v2888_v55 = vld [vmem:[%s4194_s1 + $0x590] ss:$8 sps:$4 sm:$0xff]  }
  0x6f   :  { %1684 = vmatpush1.bf16.msra.mxu1 %v2797_v56  ;;  %v2893_v56 = vld [vmem:[%s4194_s1 + $0x2a4] ss:$8 sps:$4 sm:$0xff]  }
  0x70   :  { %1807 = vmatpush1.bf16.msra.mxu0 %v2800_v57  ;;  %1685 = vmatprep.subr.bf16.mxu1 %v2805_v58  ;;  %v2896_v57 = vld [vmem:[%s4194_s1 + $0x5a4] ss:$8 sps:$4 sm:$0xff]   ;;  %v2891_v58 = vld [vmem:[%s4194_s1 + $0x2a0] ss:$8 sps:$4 sm:$0xff]  }
  0x71   :  { %1808 = vmatprep.subr.bf16.mxu0 %v2808_v59  ;;  %v2894_v59 = vld [vmem:[%s4194_s1 + $0x5a0] ss:$8 sps:$4 sm:$0xff]  }
  0x73   :  { %1686 = vmatpush1.bf16.msra.mxu1 %v2803_v60  ;;  %v2899_v60 = vld [vmem:[%s4194_s1 + $0x2b4] ss:$8 sps:$4 sm:$0xff]  }
  0x74   :  { %1809 = vmatpush1.bf16.msra.mxu0 %v2806_v61  ;;  %1687 = vmatprep.subr.bf16.mxu1 %v2811_v62  ;;  %v2902_v61 = vld [vmem:[%s4194_s1 + $0x5b4] ss:$8 sps:$4 sm:$0xff]   ;;  %v2897_v62 = vld [vmem:[%s4194_s1 + $0x2b0] ss:$8 sps:$4 sm:$0xff]  }
  0x75   :  { %1810 = vmatprep.subr.bf16.mxu0 %v2814_v63  ;;  %v2900_v63 = vld [vmem:[%s4194_s1 + $0x5b0] ss:$8 sps:$4 sm:$0xff]  }
  0x77   :  { %1688 = vmatpush1.bf16.msra.mxu1 %v2809_v0  ;;  %v2905_v0 = vld [vmem:[%s4194_s1 + $0x2c4] ss:$8 sps:$4 sm:$0xff]  }
  0x78   :  { %1811 = vmatpush1.bf16.msra.mxu0 %v2812_v1  ;;  %1689 = vmatprep.subr.bf16.mxu1 %v2817_v2  ;;  %v2908_v1 = vld [vmem:[%s4194_s1 + $0x5c4] ss:$8 sps:$4 sm:$0xff]   ;;  %v2903_v2 = vld [vmem:[%s4194_s1 + $0x2c0] ss:$8 sps:$4 sm:$0xff]  }
  0x79   :  { %1812 = vmatprep.subr.bf16.mxu0 %v2820_v3  ;;  %v2906_v3 = vld [vmem:[%s4194_s1 + $0x5c0] ss:$8 sps:$4 sm:$0xff]  }
  0x7b   :  { %1690 = vmatpush1.bf16.msra.mxu1 %v2815_v4  ;;  %v2911_v4 = vld [vmem:[%s4194_s1 + $0x2d4] ss:$8 sps:$4 sm:$0xff]  }
  0x7c   :  { %1813 = vmatpush1.bf16.msra.mxu0 %v2818_v5  ;;  %1691 = vmatprep.subr.bf16.mxu1 %v2823_v6  ;;  %v2914_v5 = vld [vmem:[%s4194_s1 + $0x5d4] ss:$8 sps:$4 sm:$0xff]   ;;  %v2909_v6 = vld [vmem:[%s4194_s1 + $0x2d0] ss:$8 sps:$4 sm:$0xff]  }
  0x7d   :  { %1814 = vmatprep.subr.bf16.mxu0 %v2826_v7  ;;  %v2912_v7 = vld [vmem:[%s4194_s1 + $0x5d0] ss:$8 sps:$4 sm:$0xff]  }
  0x7f   :  { %1692 = vmatpush1.bf16.msra.mxu1 %v2821_v8  ;;  %v2917_v8 = vld [vmem:[%s4194_s1 + $0x2e4] ss:$8 sps:$4 sm:$0xff]  }
  0x80   :  { %1815 = vmatpush1.bf16.msra.mxu0 %v2824_v9  ;;  %1702 = vmatprep.subr.bf16.mxu1 %v2831_v10  ;;  %v2920_v9 = vld [vmem:[%s4194_s1 + $0x5e4] ss:$8 sps:$4 sm:$0xff]   ;;  %v2915_v10 = vld [vmem:[%s4194_s1 + $0x2e0] ss:$8 sps:$4 sm:$0xff]  }
  0x81   :  { %1825 = vmatprep.subr.bf16.mxu0 %v2836_v11  ;;  %v2918_v11 = vld [vmem:[%s4194_s1 + $0x5e0] ss:$8 sps:$4 sm:$0xff]  }
  0x82   :  { %1694 = vmatmul.mubr.bf16.vlgmr.msra.gmra.mrb[0].mxu1 %v2205_v12  ;;  %v2923_v12 = vld [vmem:[%s4194_s1 + $0x2f4] ss:$8 sps:$4 sm:$0xff]  }
  0x83   :  { %1817 = vmatmul.mubr.bf16.vlgmr.msra.gmra.mrb[0].mxu0 %v2211_v14  ;;  %1703 = vmatpush1.bf16.msra.mxu1 %v2829_v13  ;;  %v2926_v13 = vld [vmem:[%s4194_s1 + $0x5f4] ss:$8 sps:$4 sm:$0xff]   ;;  %v2921_v14 = vld [vmem:[%s4194_s1 + $0x2f0] ss:$8 sps:$4 sm:$0xff]  }
  0x84   :  { %1826 = vmatpush1.bf16.msra.mxu0 %v2834_v15  ;;  %1704 = vmatprep.subr.bf16.mxu1 %v2839_v16  ;;  %v2924_v15 = vld [vmem:[%s4194_s1 + $0x5f0] ss:$8 sps:$4 sm:$0xff]   ;;  %v2933_v16 = vld [vmem:[%s4194_s1 + $0x604] ss:$8 sps:$4 sm:$0xff]  }
  0x85   :  { %1827 = vmatprep.subr.bf16.mxu0 %v2842_v17  ;;  %1734 = vmatprep.mubr.bf16.mxu1 %v2208_v20  ;;  %v3685_v17 = vld [vmem:[%s4195_s0 + $0x30] sm:$0xff]  ;;  %v2207_v20 = vcombine.low %v3494_v18, %v3494_v18 }
  0x86   :  { %1857 = vmatprep.mubr.bf16.mxu0 %v2214_v21  ;;  %v2213_v21 = vcombine.low %v3499_v19, %v3499_v19  ;;  %v2934_v18 = vld [vmem:[%s4194_s1 + $0x610] ss:$8 sps:$4 sm:$0xff]   ;;  %v2939_v19 = vld [vmem:[%s4194_s1 + $0x624] ss:$8 sps:$4 sm:$0xff]  }
  0x87   :  { %1705 = vmatpush1.bf16.msra.mxu1 %v2837_v22  ;;  %v2931_v22 = vld [vmem:[%s4194_s1 + $0x600] ss:$8 sps:$4 sm:$0xff]  }
  0x88   :  { %1828 = vmatpush1.bf16.msra.mxu0 %v2840_v23  ;;  %1706 = vmatprep.subr.bf16.mxu1 %v2845_v24  ;;  %v2216_v23 = vcombine.high %v3685_v17, %v3685_v17  ;;  %v2936_v24 = vld [vmem:[%s4194_s1 + $0x614] ss:$8 sps:$4 sm:$0xff]  }
  0x89   :  { %1829 = vmatprep.subr.bf16.mxu0 %v2848_v25  ;;  %v2937_v25 = vld [vmem:[%s4194_s1 + $0x620] ss:$8 sps:$4 sm:$0xff]  }
  0x8b   :  { %1707 = vmatpush1.bf16.msra.mxu1 %v2843_v26  ;;  %v2942_v26 = vld [vmem:[%s4194_s1 + $0x634] ss:$8 sps:$4 sm:$0xff]  }
  0x8c   :  { %1830 = vmatpush1.bf16.msra.mxu0 %v2846_v27  ;;  %1708 = vmatprep.subr.bf16.mxu1 %v2851_v28  ;;  %v2940_v27 = vld [vmem:[%s4194_s1 + $0x630] ss:$8 sps:$4 sm:$0xff]   ;;  %v2945_v28 = vld [vmem:[%s4194_s1 + $0x644] ss:$8 sps:$4 sm:$0xff]  }
  0x8d   :  { %1831 = vmatprep.subr.bf16.mxu0 %v2854_v29  ;;  %v2943_v29 = vld [vmem:[%s4194_s1 + $0x640] ss:$8 sps:$4 sm:$0xff]  }
  0x8f   :  { %1709 = vmatpush1.bf16.msra.mxu1 %v2849_v30  ;;  %v2948_v30 = vld [vmem:[%s4194_s1 + $0x654] ss:$8 sps:$4 sm:$0xff]  }
  0x90   :  { %1832 = vmatpush1.bf16.msra.mxu0 %v2852_v31  ;;  %1710 = vmatprep.subr.bf16.mxu1 %v2857_v32  ;;  %v2946_v31 = vld [vmem:[%s4194_s1 + $0x650] ss:$8 sps:$4 sm:$0xff]   ;;  %v2951_v32 = vld [vmem:[%s4194_s1 + $0x664] ss:$8 sps:$4 sm:$0xff]  }
  0x91   :  { %1833 = vmatprep.subr.bf16.mxu0 %v2860_v33  ;;  %v2949_v33 = vld [vmem:[%s4194_s1 + $0x660] ss:$8 sps:$4 sm:$0xff]  }
  0x93   :  { %1711 = vmatpush1.bf16.msra.mxu1 %v2855_v34  ;;  %v2954_v34 = vld [vmem:[%s4194_s1 + $0x674] ss:$8 sps:$4 sm:$0xff]  }
  0x94   :  { %1834 = vmatpush1.bf16.msra.mxu0 %v2858_v35  ;;  %1712 = vmatprep.subr.bf16.mxu1 %v2863_v36  ;;  %v2952_v35 = vld [vmem:[%s4194_s1 + $0x670] ss:$8 sps:$4 sm:$0xff]   ;;  %v2957_v36 = vld [vmem:[%s4194_s1 + $0x684] ss:$8 sps:$4 sm:$0xff]  }
  0x95   :  { %1835 = vmatprep.subr.bf16.mxu0 %v2866_v37  ;;  %v2955_v37 = vld [vmem:[%s4194_s1 + $0x680] ss:$8 sps:$4 sm:$0xff]  }
  0x97   :  { %1713 = vmatpush1.bf16.msra.mxu1 %v2861_v38  ;;  %v2960_v38 = vld [vmem:[%s4194_s1 + $0x694] ss:$8 sps:$4 sm:$0xff]  }
  0x98   :  { %1836 = vmatpush1.bf16.msra.mxu0 %v2864_v39  ;;  %1714 = vmatprep.subr.bf16.mxu1 %v2869_v40  ;;  %v2958_v39 = vld [vmem:[%s4194_s1 + $0x690] ss:$8 sps:$4 sm:$0xff]   ;;  %v2963_v40 = vld [vmem:[%s4194_s1 + $0x6a4] ss:$8 sps:$4 sm:$0xff]  }
  0x99   :  { %1837 = vmatprep.subr.bf16.mxu0 %v2872_v41  ;;  %v2961_v41 = vld [vmem:[%s4194_s1 + $0x6a0] ss:$8 sps:$4 sm:$0xff]  }
  0x9b   :  { %1715 = vmatpush1.bf16.msra.mxu1 %v2867_v42  ;;  %v2966_v42 = vld [vmem:[%s4194_s1 + $0x6b4] ss:$8 sps:$4 sm:$0xff]  }
  0x9c   :  { %1838 = vmatpush1.bf16.msra.mxu0 %v2870_v43  ;;  %1716 = vmatprep.subr.bf16.mxu1 %v2875_v44  ;;  %v2964_v43 = vld [vmem:[%s4194_s1 + $0x6b0] ss:$8 sps:$4 sm:$0xff]   ;;  %v2969_v44 = vld [vmem:[%s4194_s1 + $0x6c4] ss:$8 sps:$4 sm:$0xff]  }
  0x9d   :  { %1839 = vmatprep.subr.bf16.mxu0 %v2878_v45  ;;  %v2967_v45 = vld [vmem:[%s4194_s1 + $0x6c0] ss:$8 sps:$4 sm:$0xff]  }
  0x9f   :  { %1717 = vmatpush1.bf16.msra.mxu1 %v2873_v46  ;;  %v2972_v46 = vld [vmem:[%s4194_s1 + $0x6d4] ss:$8 sps:$4 sm:$0xff]  }
  0xa0   :  { %1840 = vmatpush1.bf16.msra.mxu0 %v2876_v47  ;;  %1718 = vmatprep.subr.bf16.mxu1 %v2881_v48  ;;  %v2970_v47 = vld [vmem:[%s4194_s1 + $0x6d0] ss:$8 sps:$4 sm:$0xff]   ;;  %v2975_v48 = vld [vmem:[%s4194_s1 + $0x6e4] ss:$8 sps:$4 sm:$0xff]  }
  0xa1   :  { %1841 = vmatprep.subr.bf16.mxu0 %v2884_v49  ;;  %v2973_v49 = vld [vmem:[%s4194_s1 + $0x6e0] ss:$8 sps:$4 sm:$0xff]  }
  0xa3   :  { %1719 = vmatpush1.bf16.msra.mxu1 %v2879_v50  ;;  %v2978_v50 = vld [vmem:[%s4194_s1 + $0x6f4] ss:$8 sps:$4 sm:$0xff]  }
  0xa4   :  { %1842 = vmatpush1.bf16.msra.mxu0 %v2882_v51  ;;  %1720 = vmatprep.subr.bf16.mxu1 %v2887_v52  ;;  %v2976_v51 = vld [vmem:[%s4194_s1 + $0x6f0] ss:$8 sps:$4 sm:$0xff]   ;;  %v2983_v52 = vld [vmem:[%s4194_s1 + $0x704] ss:$8 sps:$4 sm:$0xff]  }
  0xa5   :  { %1843 = vmatprep.subr.bf16.mxu0 %v2890_v53  ;;  %v3792_v53 = vld [vmem:[%s4195_s0 + $0x38] sm:$0xff] }
  0xa7   :  { %1721 = vmatpush1.bf16.msra.mxu1 %v2885_v54  ;;  %v2215_v54 = vcombine.low %v3685_v17, %v3685_v17  ;;  %v1954_v17 = vld [vmem:[%s4196_s2 + $0x30] sm:$0xff] }
  0xa8   :  { %1844 = vmatpush1.bf16.msra.mxu0 %v2888_v55  ;;  %1722 = vmatprep.subr.bf16.mxu1 %v2893_v56  ;;  %v2981_v55 = vld [vmem:[%s4194_s1 + $0x700] ss:$8 sps:$4 sm:$0xff]   ;;  %v2218_v56 = vcombine.high %v3792_v53, %v3792_v53 }
  0xa9   :  { %1845 = vmatprep.subr.bf16.mxu0 %v2896_v57  ;;  %v2986_v57 = vld [vmem:[%s4194_s1 + $0x714] ss:$8 sps:$4 sm:$0xff]  }
  0xab   :  { %1723 = vmatpush1.bf16.msra.mxu1 %v2891_v58  ;;  %v2984_v58 = vld [vmem:[%s4194_s1 + $0x710] ss:$8 sps:$4 sm:$0xff]  }
  0xac   :  { %1846 = vmatpush1.bf16.msra.mxu0 %v2894_v59  ;;  %1724 = vmatprep.subr.bf16.mxu1 %v2899_v60  ;;  %v2989_v59 = vld [vmem:[%s4194_s1 + $0x724] ss:$8 sps:$4 sm:$0xff]   ;;  %v2987_v60 = vld [vmem:[%s4194_s1 + $0x720] ss:$8 sps:$4 sm:$0xff]  }
  0xad   :  { %1847 = vmatprep.subr.bf16.mxu0 %v2902_v61  ;;  %v2992_v61 = vld [vmem:[%s4194_s1 + $0x734] ss:$8 sps:$4 sm:$0xff]  }
  0xaf   :  { %1725 = vmatpush1.bf16.msra.mxu1 %v2897_v62  ;;  %v2990_v62 = vld [vmem:[%s4194_s1 + $0x730] ss:$8 sps:$4 sm:$0xff]  }
  0xb0   :  { %1848 = vmatpush1.bf16.msra.mxu0 %v2900_v63  ;;  %1726 = vmatprep.subr.bf16.mxu1 %v2905_v0  ;;  %v2995_v63 = vld [vmem:[%s4194_s1 + $0x744] ss:$8 sps:$4 sm:$0xff]   ;;  %v2993_v0 = vld [vmem:[%s4194_s1 + $0x740] ss:$8 sps:$4 sm:$0xff]  }
  0xb1   :  { %1849 = vmatprep.subr.bf16.mxu0 %v2908_v1  ;;  %v2998_v1 = vld [vmem:[%s4194_s1 + $0x754] ss:$8 sps:$4 sm:$0xff]  }
  0xb3   :  { %1727 = vmatpush1.bf16.msra.mxu1 %v2903_v2  ;;  %v2996_v2 = vld [vmem:[%s4194_s1 + $0x750] ss:$8 sps:$4 sm:$0xff]  }
  0xb4   :  { %1850 = vmatpush1.bf16.msra.mxu0 %v2906_v3  ;;  %1728 = vmatprep.subr.bf16.mxu1 %v2911_v4  ;;  %v3001_v3 = vld [vmem:[%s4194_s1 + $0x764] ss:$8 sps:$4 sm:$0xff]   ;;  %v2999_v4 = vld [vmem:[%s4194_s1 + $0x760] ss:$8 sps:$4 sm:$0xff]  }
  0xb5   :  { %1851 = vmatprep.subr.bf16.mxu0 %v2914_v5  ;;  %v3004_v5 = vld [vmem:[%s4194_s1 + $0x774] ss:$8 sps:$4 sm:$0xff]  }
  0xb7   :  { %1729 = vmatpush1.bf16.msra.mxu1 %v2909_v6  ;;  %v3002_v6 = vld [vmem:[%s4194_s1 + $0x770] ss:$8 sps:$4 sm:$0xff]  }
  0xb8   :  { %1852 = vmatpush1.bf16.msra.mxu0 %v2912_v7  ;;  %1730 = vmatprep.subr.bf16.mxu1 %v2917_v8  ;;  %v1949_v7 = vld [vmem:[%s4196_s2 + $0x8] sm:$0xff]  ;;  %v1951_v8 = vld [vmem:[%s4196_s2 + $0x18] sm:$0xff] }
  0xb9   :  { %1853 = vmatprep.subr.bf16.mxu0 %v2920_v9  ;;  %v1948_v9 = vld [vmem:[%s4196_s2] sm:$0xff] }
  0xbb   :  { %1731 = vmatpush1.bf16.msra.mxu1 %v2915_v10  ;;  %v3852_v10 = vpack.c.bf16 %v1951_v8, %v1949_v7  ;;  %v1980_v8 = vld [vmem:[%s4196_s2 + $0x100] sm:$0xff] }
  0xbc   :  { %1854 = vmatpush1.bf16.msra.mxu0 %v2918_v11  ;;  %1732 = vmatprep.subr.bf16.mxu1 %v2923_v12  ;;  %v1950_v11 = vld [vmem:[%s4196_s2 + $0x10] sm:$0xff]  ;;  %v1953_v12 = vld [vmem:[%s4196_s2 + $0x28] sm:$0xff] }
  0xbd   :  { %1855 = vmatprep.subr.bf16.mxu0 %v2926_v13  ;;  %v1955_v13 = vld [vmem:[%s4196_s2 + $0x38] sm:$0xff] }
  0xbf   :  { %1733 = vmatpush1.bf16.msra.mxu1 %v2921_v14  ;;  %v3863_v14 = vpack.c.bf16 %v1950_v11, %v1948_v9  ;;  %v1982_v9 = vld [vmem:[%s4196_s2 + $0x110] sm:$0xff]  ;;  %v3023_v11 = vld [vmem:[%s4194_s1 + $0x7e0] ss:$8 sps:$4 sm:$0xff]  }
  0xc0   :  { %1856 = vmatpush1.bf16.msra.mxu0 %v2924_v15  ;;  %v3865_v15 = vpack.c.bf16 %v1955_v13, %v1953_v12  ;;  %2478 = vmatprep.subr.bf16.mxu1 %v3852_v10  ;;  %v1985_v12 = vld [vmem:[%s4196_s2 + $0x128] sm:$0xff]  ;;  %v1987_v13 = vld [vmem:[%s4196_s2 + $0x138] sm:$0xff] }
  0xc1   :  { %1866 = vmatprep.subr.bf16.mxu0 %v2933_v16  ;;  %v1952_v16 = vld [vmem:[%s4196_s2 + $0x20] sm:$0xff] }
  0xc2   :  { %1735 = vmatmul.mubr.bf16.vlgmr.msra.gmra.mrb[0].mxu1 %v2207_v20  ;;  %v1957_v20 = vld [vmem:[%s4196_s2 + $0x48] sm:$0xff] }
  0xc3   :  { %1858 = vmatmul.mubr.bf16.vlgmr.msra.gmra.mrb[0].mxu0 %v2213_v21  ;;  %v3007_v21 = vld [vmem:[%s4194_s1 + $0x784] ss:$8 sps:$4 sm:$0xff]   ;;  %2480 = vmatpush1.bf16.msra.mxu1 %v3863_v14 }
  0xc4   :  { %1867 = vmatpush1.bf16.msra.mxu0 %v2931_v22  ;;  %1898 = vmatprep.mubr.bf16.mxu0 %v2216_v23  ;;  %v1959_v22 = vld [vmem:[%s4196_s2 + $0x58] sm:$0xff]  ;;  %v3884_v23 = vpack.c.bf16 %v1954_v17, %v1952_v16  ;;  %v4052_v17 = vpack.c.bf16 %v1982_v9, %v1980_v8  ;;  %v2010_v8 = vld [vmem:[%s4196_s2 + $0x1f0] sm:$0xff] }
  0xc5   :  { %1868 = vmatprep.subr.bf16.mxu0 %v2936_v24  ;;  %2482 = vmatprep.subr.bf16.mxu1 %v3865_v15  ;;  %v3887_v24 = vpack.c.bf16 %v1959_v22, %v1957_v20  ;;  %v3028_v16 = vld [vmem:[%s4194_s1 + $0x7f4] ss:$8 sps:$4 sm:$0xff]   ;;  %v4055_v20 = vpack.c.bf16 %v1987_v13, %v1985_v12 }
  0xc6   :  { %v1986_v22 = vld [vmem:[%s4196_s2 + $0x130] sm:$0xff] }
  0xc7   :  { %2484 = vmatpush1.bf16.msra.mxu1 %v3884_v23 }
  0xc8   :  { %1869 = vmatpush1.bf16.msra.mxu0 %v2934_v18  ;;  %v1956_v18 = vld [vmem:[%s4196_s2 + $0x40] sm:$0xff]  ;;  %2486 = vmatprep.subr.bf16.mxu1 %v3887_v24 }
  0xc9   :  { %1870 = vmatprep.subr.bf16.mxu0 %v2939_v19  ;;  %v1958_v19 = vld [vmem:[%s4196_s2 + $0x50] sm:$0xff] }
  0xcc   :  { %1871 = vmatpush1.bf16.msra.mxu0 %v2937_v25  ;;  %v3005_v25 = vld [vmem:[%s4194_s1 + $0x780] ss:$8 sps:$4 sm:$0xff]  }
  0xcd   :  { %1872 = vmatprep.subr.bf16.mxu0 %v2942_v26  ;;  %v1961_v26 = vld [vmem:[%s4196_s2 + $0x68] sm:$0xff] }
  0xd0   :  { %1873 = vmatpush1.bf16.msra.mxu0 %v2940_v27  ;;  %v1963_v27 = vld [vmem:[%s4196_s2 + $0x78] sm:$0xff] }
  0xd1   :  { %1874 = vmatprep.subr.bf16.mxu0 %v2945_v28  ;;  %v3010_v28 = vld [vmem:[%s4194_s1 + $0x794] ss:$8 sps:$4 sm:$0xff]  }
  0xd4   :  { %1875 = vmatpush1.bf16.msra.mxu0 %v2943_v29  ;;  %v3908_v29 = vpack.c.bf16 %v1958_v19, %v1956_v18  ;;  %v3026_v18 = vld [vmem:[%s4194_s1 + $0x7f0] ss:$8 sps:$4 sm:$0xff]   ;;  %v1989_v19 = vld [vmem:[%s4196_s2 + $0x148] sm:$0xff] }
  0xd5   :  { %1876 = vmatprep.subr.bf16.mxu0 %v2948_v30  ;;  %v3911_v30 = vpack.c.bf16 %v1963_v27, %v1961_v26  ;;  %v2217_v27 = vcombine.low %v3792_v53, %v3792_v53  ;;  %v1995_v53 = vld [vmem:[%s4196_s2 + $0x178] sm:$0xff] }
  0xd6   :  { %2488 = vmatpush1.bf16.msra.mxu1 %v3908_v29 }
  0xd7   :  { %2490 = vmatprep.subr.bf16.mxu1 %v3911_v30 }
  0xd8   :  { %1877 = vmatpush1.bf16.msra.mxu0 %v2946_v31  ;;  %v1960_v31 = vld [vmem:[%s4196_s2 + $0x60] sm:$0xff] }
  0xd9   :  { %1878 = vmatprep.subr.bf16.mxu0 %v2951_v32  ;;  %v1962_v32 = vld [vmem:[%s4196_s2 + $0x70] sm:$0xff] }
  0xdc   :  { %1879 = vmatpush1.bf16.msra.mxu0 %v2949_v33  ;;  %v3008_v33 = vld [vmem:[%s4194_s1 + $0x790] ss:$8 sps:$4 sm:$0xff]  }
  0xdd   :  { %1880 = vmatprep.subr.bf16.mxu0 %v2954_v34  ;;  %v1965_v34 = vld [vmem:[%s4196_s2 + $0x88] sm:$0xff] }
  0xe0   :  { %1881 = vmatpush1.bf16.msra.mxu0 %v2952_v35  ;;  %v1967_v35 = vld [vmem:[%s4196_s2 + $0x98] sm:$0xff] }
  0xe1   :  { %1882 = vmatprep.subr.bf16.mxu0 %v2957_v36  ;;  %v3013_v36 = vld [vmem:[%s4194_s1 + $0x7a4] ss:$8 sps:$4 sm:$0xff]  }
  0xe4   :  { %1883 = vmatpush1.bf16.msra.mxu0 %v2955_v37  ;;  %v3932_v37 = vpack.c.bf16 %v1962_v32, %v1960_v31  ;;  %v1988_v31 = vld [vmem:[%s4196_s2 + $0x140] sm:$0xff]  ;;  %v1990_v32 = vld [vmem:[%s4196_s2 + $0x150] sm:$0xff] }
  0xe5   :  { %1884 = vmatprep.subr.bf16.mxu0 %v2960_v38  ;;  %v3935_v38 = vpack.c.bf16 %v1967_v35, %v1965_v34  ;;  %v4093_v34 = vpack.c.bf16 %v1990_v32, %v1988_v31 }
  0xe6   :  { %2492 = vmatpush1.bf16.msra.mxu1 %v3932_v37 }
  0xe7   :  { %2494 = vmatprep.subr.bf16.mxu1 %v3935_v38 }
  0xe8   :  { %1885 = vmatpush1.bf16.msra.mxu0 %v2958_v39  ;;  %v1964_v39 = vld [vmem:[%s4196_s2 + $0x80] sm:$0xff] }
  0xe9   :  { %1886 = vmatprep.subr.bf16.mxu0 %v2963_v40  ;;  %v1966_v40 = vld [vmem:[%s4196_s2 + $0x90] sm:$0xff] }
  0xec   :  { %1887 = vmatpush1.bf16.msra.mxu0 %v2961_v41  ;;  %v3011_v41 = vld [vmem:[%s4194_s1 + $0x7a0] ss:$8 sps:$4 sm:$0xff]  }
  0xed   :  { %1888 = vmatprep.subr.bf16.mxu0 %v2966_v42  ;;  %v1969_v42 = vld [vmem:[%s4196_s2 + $0xa8] sm:$0xff] }
  0xf0   :  { %1889 = vmatpush1.bf16.msra.mxu0 %v2964_v43  ;;  %v1971_v43 = vld [vmem:[%s4196_s2 + $0xb8] sm:$0xff] }
  0xf1   :  { %1890 = vmatprep.subr.bf16.mxu0 %v2969_v44  ;;  %v3016_v44 = vld [vmem:[%s4194_s1 + $0x7b4] ss:$8 sps:$4 sm:$0xff]  }
  0xf4   :  { %1891 = vmatpush1.bf16.msra.mxu0 %v2967_v45  ;;  %v3956_v45 = vpack.c.bf16 %v1966_v40, %v1964_v39  ;;  %v1994_v39 = vld [vmem:[%s4196_s2 + $0x170] sm:$0xff]  ;;  %v1997_v40 = vld [vmem:[%s4196_s2 + $0x188] sm:$0xff] }
  0xf5   :  { %1892 = vmatprep.subr.bf16.mxu0 %v2972_v46  ;;  %v3959_v46 = vpack.c.bf16 %v1971_v43, %v1969_v42 }
  0xf6   :  { %2496 = vmatpush1.bf16.msra.mxu1 %v3956_v45 }
  0xf7   :  { %2498 = vmatprep.subr.bf16.mxu1 %v3959_v46 }
  0xf8   :  { %1893 = vmatpush1.bf16.msra.mxu0 %v2970_v47  ;;  %v1968_v47 = vld [vmem:[%s4196_s2 + $0xa0] sm:$0xff] }
  0xf9   :  { %1894 = vmatprep.subr.bf16.mxu0 %v2975_v48  ;;  %v1970_v48 = vld [vmem:[%s4196_s2 + $0xb0] sm:$0xff] }
  0xfc   :  { %1895 = vmatpush1.bf16.msra.mxu0 %v2973_v49  ;;  %v3014_v49 = vld [vmem:[%s4194_s1 + $0x7b0] ss:$8 sps:$4 sm:$0xff]  }
  0xfd   :  { %1896 = vmatprep.subr.bf16.mxu0 %v2978_v50  ;;  %v1973_v50 = vld [vmem:[%s4196_s2 + $0xc8] sm:$0xff] }
 0x100   :  { %1897 = vmatpush1.bf16.msra.mxu0 %v2976_v51  ;;  %v1975_v51 = vld [vmem:[%s4196_s2 + $0xd8] sm:$0xff] }
 0x101   :  { %1907 = vmatprep.subr.bf16.mxu0 %v2983_v52  ;;  %v3019_v52 = vld [vmem:[%s4194_s1 + $0x7c4] ss:$8 sps:$4 sm:$0xff]  }
 0x103   :  { %1899 = vmatmul.mubr.bf16.vlgmr.msra.gmra.mrb[0].mxu0 %v2215_v54  ;;  %v3980_v54 = vpack.c.bf16 %v1970_v48, %v1968_v47  ;;  %v1998_v47 = vld [vmem:[%s4196_s2 + $0x190] sm:$0xff]  ;;  %v2001_v48 = vld [vmem:[%s4196_s2 + $0x1a8] sm:$0xff] }
 0x104   :  { %1908 = vmatpush1.bf16.msra.mxu0 %v2981_v55  ;;  %1939 = vmatprep.mubr.bf16.mxu0 %v2218_v56  ;;  %v3983_v55 = vpack.c.bf16 %v1975_v51, %v1973_v50  ;;  %v1972_v56 = vld [vmem:[%s4196_s2 + $0xc0] sm:$0xff] }
 0x105   :  { %1909 = vmatprep.subr.bf16.mxu0 %v2986_v57  ;;  %v1974_v57 = vld [vmem:[%s4196_s2 + $0xd0] sm:$0xff]  ;;  %2500 = vmatpush1.bf16.msra.mxu1 %v3980_v54 }
 0x106   :  { %2502 = vmatprep.subr.bf16.mxu1 %v3983_v55 }
 0x108   :  { %1910 = vmatpush1.bf16.msra.mxu0 %v2984_v58  ;;  %v3017_v58 = vld [vmem:[%s4194_s1 + $0x7c0] ss:$8 sps:$4 sm:$0xff]  }
 0x109   :  { %1911 = vmatprep.subr.bf16.mxu0 %v2989_v59  ;;  %v1977_v59 = vld [vmem:[%s4196_s2 + $0xe8] sm:$0xff] }
 0x10c   :  { %1912 = vmatpush1.bf16.msra.mxu0 %v2987_v60  ;;  %v1979_v60 = vld [vmem:[%s4196_s2 + $0xf8] sm:$0xff] }
 0x10d   :  { %1913 = vmatprep.subr.bf16.mxu0 %v2992_v61  ;;  %v3022_v61 = vld [vmem:[%s4194_s1 + $0x7d4] ss:$8 sps:$4 sm:$0xff]  }
 0x110   :  { %1914 = vmatpush1.bf16.msra.mxu0 %v2990_v62  ;;  %v4004_v62 = vpack.c.bf16 %v1974_v57, %v1972_v56  ;;  %v2002_v56 = vld [vmem:[%s4196_s2 + $0x1b0] sm:$0xff]  ;;  %v2005_v57 = vld [vmem:[%s4196_s2 + $0x1c8] sm:$0xff] }
 0x111   :  { %1915 = vmatprep.subr.bf16.mxu0 %v2995_v63  ;;  %v4007_v63 = vpack.c.bf16 %v1979_v60, %v1977_v59 }
 0x112   :  { %2504 = vmatpush1.bf16.msra.mxu1 %v4004_v62 }
 0x113   :  { %2506 = vmatprep.subr.bf16.mxu1 %v4007_v63 }
 0x114   :  { %1916 = vmatpush1.bf16.msra.mxu0 %v2993_v0  ;;  %v1976_v0 = vld [vmem:[%s4196_s2 + $0xe0] sm:$0xff] }
 0x115   :  { %1917 = vmatprep.subr.bf16.mxu0 %v2998_v1  ;;  %v1978_v1 = vld [vmem:[%s4196_s2 + $0xf0] sm:$0xff] }
 0x118   :  { %1918 = vmatpush1.bf16.msra.mxu0 %v2996_v2  ;;  %v3020_v2 = vld [vmem:[%s4194_s1 + $0x7d0] ss:$8 sps:$4 sm:$0xff]  }
 0x119   :  { %1919 = vmatprep.subr.bf16.mxu0 %v3001_v3  ;;  %v1981_v3 = vld [vmem:[%s4196_s2 + $0x108] sm:$0xff] }
 0x11c   :  { %1920 = vmatpush1.bf16.msra.mxu0 %v2999_v4  ;;  %v1983_v4 = vld [vmem:[%s4196_s2 + $0x118] sm:$0xff] }
 0x11d   :  { %1921 = vmatprep.subr.bf16.mxu0 %v3004_v5  ;;  %v3025_v5 = vld [vmem:[%s4194_s1 + $0x7e4] ss:$8 sps:$4 sm:$0xff]   ;;  %v4031_v7 = vpack.c.bf16 %v1983_v4, %v1981_v3  ;;  %v2011_v3 = vld [vmem:[%s4196_s2 + $0x1f8] sm:$0xff] }
 0x120   :  { %1922 = vmatpush1.bf16.msra.mxu0 %v3002_v6  ;;  %v4028_v6 = vpack.c.bf16 %v1978_v1, %v1976_v0  ;;  %v2006_v0 = vld [vmem:[%s4196_s2 + $0x1d0] sm:$0xff] }
 0x121   :  { %1923 = vmatprep.subr.bf16.mxu0 %v3007_v21  ;;  %v1984_v21 = vld [vmem:[%s4196_s2 + $0x120] sm:$0xff] }
 0x122   :  { %2508 = vmatpush1.bf16.msra.mxu1 %v4028_v6  ;;  %v4073_v26 = vpack.c.bf16 %v1986_v22, %v1984_v21 }
 0x123   :  { %2510 = vmatprep.subr.bf16.mxu1 %v4031_v7 }
 0x124   :  { %1924 = vmatpush1.bf16.msra.mxu0 %v3005_v25  ;;  %v1991_v25 = vld [vmem:[%s4196_s2 + $0x158] sm:$0xff] }
 0x125   :  { %1925 = vmatprep.subr.bf16.mxu0 %v3010_v28  ;;  %v4078_v28 = vpack.c.bf16 %v1991_v25, %v1989_v19 }
 0x126   :  { %2512 = vmatpush1.bf16.msra.mxu1 %v4052_v17 }
 0x127   :  { %2514 = vmatprep.subr.bf16.mxu1 %v4055_v20 }
 0x128   :  { %1926 = vmatpush1.bf16.msra.mxu0 %v3008_v33  ;;  %v1993_v33 = vld [vmem:[%s4196_s2 + $0x168] sm:$0xff] }
 0x129   :  { %1927 = vmatprep.subr.bf16.mxu0 %v3013_v36  ;;  %v4096_v35 = vpack.c.bf16 %v1995_v53, %v1993_v33  ;;  %v1992_v36 = vld [vmem:[%s4196_s2 + $0x160] sm:$0xff] }
 0x12a   :  { %2516 = vmatpush1.bf16.msra.mxu1 %v4073_v26  ;;  %v4111_v42 = vpack.c.bf16 %v1994_v39, %v1992_v36 }
 0x12b   :  { %2518 = vmatprep.subr.bf16.mxu1 %v4078_v28 }
 0x12c   :  { %1928 = vmatpush1.bf16.msra.mxu0 %v3011_v41  ;;  %v1999_v41 = vld [vmem:[%s4196_s2 + $0x198] sm:$0xff] }
 0x12d   :  { %1929 = vmatprep.subr.bf16.mxu0 %v3016_v44  ;;  %v4114_v43 = vpack.c.bf16 %v1999_v41, %v1997_v40  ;;  %v1996_v44 = vld [vmem:[%s4196_s2 + $0x180] sm:$0xff] }
 0x12e   :  { %2520 = vmatpush1.bf16.msra.mxu1 %v4093_v34  ;;  %v2527_v50 = vpack.c.bf16 %v1998_v47, %v1996_v44 }
 0x12f   :  { %2522 = vmatprep.subr.bf16.mxu1 %v4096_v35 }
 0x130   :  { %1930 = vmatpush1.bf16.msra.mxu0 %v3014_v49  ;;  %v2003_v49 = vld [vmem:[%s4196_s2 + $0x1b8] sm:$0xff] }
 0x131   :  { %1931 = vmatprep.subr.bf16.mxu0 %v3019_v52  ;;  %v2529_v51 = vpack.c.bf16 %v2003_v49, %v2001_v48  ;;  %v2000_v52 = vld [vmem:[%s4196_s2 + $0x1a0] sm:$0xff] }
 0x132   :  { %2524 = vmatpush1.bf16.msra.mxu1 %v4111_v42  ;;  %v2531_v59 = vpack.c.bf16 %v2002_v56, %v2000_v52 }
 0x133   :  { %2526 = vmatprep.subr.bf16.mxu1 %v4114_v43 }
 0x134   :  { %1932 = vmatpush1.bf16.msra.mxu0 %v3017_v58  ;;  %v2007_v58 = vld [vmem:[%s4196_s2 + $0x1d8] sm:$0xff] }
 0x135   :  { %1933 = vmatprep.subr.bf16.mxu0 %v3022_v61  ;;  %v2533_v60 = vpack.c.bf16 %v2007_v58, %v2005_v57  ;;  %v2004_v61 = vld [vmem:[%s4196_s2 + $0x1c0] sm:$0xff] }
 0x136   :  { %2528 = vmatpush1.bf16.msra.mxu1 %v2527_v50  ;;  %v2535_v1 = vpack.c.bf16 %v2006_v0, %v2004_v61 }
 0x137   :  { %2530 = vmatprep.subr.bf16.mxu1 %v2529_v51 }
 0x138   :  { %1934 = vmatpush1.bf16.msra.mxu0 %v3020_v2  ;;  %v2009_v2 = vld [vmem:[%s4196_s2 + $0x1e8] sm:$0xff] }
 0x139   :  { %1935 = vmatprep.subr.bf16.mxu0 %v3025_v5  ;;  %v2537_v4 = vpack.c.bf16 %v2011_v3, %v2009_v2  ;;  %v2008_v5 = vld [vmem:[%s4196_s2 + $0x1e0] sm:$0xff] }
 0x13a   :  { %2532 = vmatpush1.bf16.msra.mxu1 %v2531_v59 }
 0x13b   :  { %2534 = vmatprep.subr.bf16.mxu1 %v2533_v60 }
 0x13c   :  { %1936 = vmatpush1.bf16.msra.mxu0 %v3023_v11  ;;  %v2539_v11 = vpack.c.bf16 %v2010_v8, %v2008_v5 }
 0x13d   :  { %1937 = vmatprep.subr.bf16.mxu0 %v3028_v16 }
 0x13e   :  { %2536 = vmatpush1.bf16.msra.mxu1 %v2535_v1 }
 0x13f   :  { %2538 = vmatprep.subr.bf16.mxu1 %v2537_v4 }
 0x140   :  { %1938 = vmatpush1.bf16.msra.mxu0 %v3026_v18 }
 0x142   :  { %2540 = vmatpush1.bf16.msra.mxu1 %v2539_v11 }
 0x143   :  { %1940 = vmatmul.mubr.bf16.vlgmr.msra.gmra.mrb[0].mxu0 %v2217_v27  ;;  %2542 = vmatprep.subr.bf16.mxu1 %v3852_v10 }
 0x195   :  { %v1736_v9 = vpop.f32.mrb[0].mxu1 }
 0x196   :  { %v1738_v12 = vpop.f32.mrb[1].mxu1 }
 0x197   :  { %v1740_v13 = vpop.f32.mrb[2].mxu1 }
 0x198   :  { %v1741_v16 = vpop.f32.mrb[3].mxu1 }
 0x216   :  { %v1941_v21 = vpop.f32.mrb[0].mxu0 }
 0x217   :  { %v2605_v22 = vadd.f32 %v1941_v21, %v1736_v9  ;;  %v1943_v18 = vpop.f32.mrb[1].mxu0 }
 0x218   :  { %v2606_v19 = vadd.f32 %v1943_v18, %v1738_v12  ;;  %v1945_v25 = vpop.f32.mrb[2].mxu0 }
 0x219   :  { %v1946_v27 = vpop.f32.mrb[3].mxu0 }
 0x21a   :  { %2076 = vmatprep.mubr.f32.mxu1 %v2606_v19 }
 0x21b   :  { %2077 = vmatmul.mubr.f32.vlgmr.msra.gmra.mrb[4].mxu1 %v2605_v22 }
 0x21c   :  { %2544 = vmatpush1.bf16.msra.mxu1 %v3863_v14 }
 0x21d   :  { %2546 = vmatprep.subr.bf16.mxu1 %v3865_v15 }
 0x220   :  { %2548 = vmatpush1.bf16.msra.mxu1 %v3884_v23 }
 0x221   :  { %2550 = vmatprep.subr.bf16.mxu1 %v3887_v24 }
 0x224   :  { %2552 = vmatpush1.bf16.msra.mxu1 %v3908_v29 }
 0x225   :  { %2554 = vmatprep.subr.bf16.mxu1 %v3911_v30 }
 0x228   :  { %2556 = vmatpush1.bf16.msra.mxu1 %v3932_v37  ;;  %v2164_v37 = vlaneseq }
 0x229   :  { %2558 = vmatprep.subr.bf16.mxu1 %v3935_v38 }
 0x22c   :  { %2560 = vmatpush1.bf16.msra.mxu1 %v3956_v45 }
 0x22d   :  { %2562 = vmatprep.subr.bf16.mxu1 %v3959_v46 }
 0x230   :  { %2564 = vmatpush1.bf16.msra.mxu1 %v3980_v54  ;;  %v2165_v54 = vshrl.u32 %v2164_v37, 7 }
 0x231   :  { %2566 = vmatprep.subr.bf16.mxu1 %v3983_v55 }
 0x232   :  { %v2166_v55 = vsub.s32 0, %v2165_v54 }
 0x234   :  { %2568 = vmatpush1.bf16.msra.mxu1 %v4004_v62  ;;  %v2162_v62 = vld [vmem:[%s4197_s3] sm:$0x3] }
 0x235   :  { %2570 = vmatprep.subr.bf16.mxu1 %v4007_v63  ;;  %v2170_v63 = vsub.s32 1, %v2165_v54 }
 0x238   :  { %2572 = vmatpush1.bf16.msra.mxu1 %v4028_v6  ;;  %v2176_v6 = vld [vmem:[%s4198_s4] sm:$0x3] }
 0x239   :  { %2574 = vmatprep.subr.bf16.mxu1 %v4031_v7  ;;  %v2167_v7 = vrot.slane %v2162_v62, %v2166_v55  ;;  %v2181_v31 = vrot.slane %v2176_v6, %v2166_v55  ;;  %v2185_v33 = vrot.slane %v2176_v6, %v2170_v63 }
 0x23c   :  { %2576 = vmatpush1.bf16.msra.mxu1 %v4052_v17 }
 0x23d   :  { %2578 = vmatprep.subr.bf16.mxu1 %v4055_v20  ;;  %v2171_v20 = vrot.slane %v2162_v62, %v2170_v63 }
 0x240   :  { %2580 = vmatpush1.bf16.msra.mxu1 %v4073_v26 }
 0x241   :  { %2582 = vmatprep.subr.bf16.mxu1 %v4078_v28 }
 0x244   :  { %2584 = vmatpush1.bf16.msra.mxu1 %v4093_v34 }
 0x245   :  { %2586 = vmatprep.subr.bf16.mxu1 %v4096_v35 }
 0x248   :  { %2588 = vmatpush1.bf16.msra.mxu1 %v4111_v42 }
 0x249   :  { %2590 = vmatprep.subr.bf16.mxu1 %v4114_v43 }
 0x24c   :  { %2592 = vmatpush1.bf16.msra.mxu1 %v2527_v50 }
 0x24d   :  { %2594 = vmatprep.subr.bf16.mxu1 %v2529_v51 }
 0x250   :  { %2596 = vmatpush1.bf16.msra.mxu1 %v2531_v59 }
 0x251   :  { %2598 = vmatprep.subr.bf16.mxu1 %v2533_v60 }
 0x254   :  { %2600 = vmatpush1.bf16.msra.mxu1 %v2535_v1 }
 0x255   :  { %2602 = vmatprep.subr.bf16.mxu1 %v2537_v4 }
 0x258   :  { %2604 = vmatpush1.bf16.msra.mxu1 %v2539_v11 }
 0x2ee   :  { %v2078_v10 = vpop.f32.mrb[4].mxu1 }
 0x2ef   :  { %v2083_v14 = vsub.f32 %v2605_v22, %v2078_v10  ;;  %v2080_v15 = vpop.f32.mrb[5].mxu1 }
 0x2f0   :  { %v2084_v23 = vsub.f32 %v2606_v19, %v2080_v15 }
 0x2f1   :  { %v2085_v29 = vmul.f32 %v2083_v14, %v2083_v14 }
 0x2f2   :  { %v2086_v24 = vmul.f32 %v2084_v23, %v2084_v23 }
 0x2f4   :  { %2151 = vmatprep.mubr.f32.mxu1 %v2086_v24 }
 0x2f5   :  { %2152 = vmatmul.mubr.f32.vlgmr.msra.gmra.mrb[6].mxu1 %v2085_v29 }
 0x3c8   :  { %v2153_v30 = vpop.f32.mrb[6].mxu1 }
 0x3c9   :  { %v2154_v38 = vadd.f32 1e-05, %v2153_v30  ;;  %v2155_v45 = vpop.f32.mrb[7].mxu1 }
 0x3ca   :  { %v2156_v46 = vadd.f32 1e-05, %v2155_v45 }
 0x3cb   :  { %3031 = vrsqrt.f32 %v2154_v38 }
 0x3cc   :  { %3033 = vrsqrt.f32 %v2156_v46 }
 0x3d5   :  { %v3032_v17 = vpop.eup %3031 }
 0x3d6   :  { %v3034_v26 = vpop.eup %3033  ;;  %v2160_v28 = vmul.f32 %v3032_v17, %v2083_v14 }
 0x3d7   :  { %v2161_v32 = vmul.f32 %v3034_v26, %v2084_v23 }
 0x3d8   :  { %v2174_v53 = vmul.f32 %v2167_v7, %v2160_v28 }
 0x3d9   :  { %v2175_v34 = vmul.f32 %v2171_v20, %v2161_v32 }
 0x3da   :  { %v2188_v35 = vadd.f32 %v2181_v31, %v2174_v53 }
 0x3db   :  { %v2189_v36 = vadd.f32 %v2185_v33, %v2175_v34 }
 0x3dd   :  { %v2476_v39 = vpack.c.bf16 %v2189_v36, %v2188_v35 }
 0x3df   :  { %2198 = vst [vmem:[%s4199_s5] sm:$0xff] %v2476_v39 }

</bundles_post_ra>
